<compile_context>
chip_gen: v7x
topology: tpu7x:2x2x1
jax: 0.10.0
libtpu: 0.0.40
codegen_flags: <defaults>
</compile_context>

<pallas_src>
import jax
import jax.numpy as jnp
from jax.experimental import pallas as pl
from jax.experimental.pallas import tpu as pltpu


FEAT = 1000          # backbone output features (EfficientNet-B4 logits)
TK_MAX = 4096        # max contraction tile for the dominant matmul
N_CORES_SPLIT = 2    # FEAT_PAD split for v7x's two TensorCores


def _round_up(n, m):
    return ((n + m - 1) // m) * m


FEAT_PAD = _round_up(FEAT, 128)            # 1024 — lane-dense feature axis
FEAT_HALF = FEAT_PAD // N_CORES_SPLIT      # 512  — per-core feature slice


# ---------------------------------------------------------------------------
# Kernel
# ---------------------------------------------------------------------------
def classifier_head_kernel(x_ref, w0_ref, b0_ref, w12_ref, o_ref, acc_ref):
    """K-tiled fused head: surrogate backbone proj -> (dropout) -> ln1·ln2.

    Grid = (c, k): c splits FEAT_PAD across TensorCores ("parallel"),
                   k tiles the contraction dim of the big matmul ("arbitrary").

    x_ref  : [B, TK]                bf16 flattened-image tile (K slice)
    w0_ref : [TK, FEAT_HALF]        bf16 surrogate-backbone weight tile
    b0_ref : [1, FEAT_HALF]         f32  backbone bias slice (zero-padded)
    w12_ref: [FEAT_HALF, CLS_PAD]   bf16 fused (ln1 @ ln2) weight slice
    o_ref  : [B, CLS_PAD]           f32  PARTIAL logits for this feature half
    acc_ref: [B, FEAT_HALF]         f32  accumulator, persistent across k
    """
    k = pl.program_id(1)

    @pl.when(k == 0)
    def _():
        acc_ref[...] = jnp.zeros_like(acc_ref)

    # bf16 operands, f32 accumulation on the MXU.
    acc_ref[...] += jnp.dot(x_ref[...], w0_ref[...],
                            preferred_element_type=jnp.float32)

    @pl.when(k == pl.num_programs(1) - 1)
    def _():
        # Backbone bias; nn.Dropout(p=0.5) in eval mode == identity.
        feat = (acc_ref[...] + b0_ref[...]).astype(jnp.bfloat16)
        # Half of the fused ln1·ln2 epilogue; b12 is added once in the wrapper
        # after the two partial halves are summed.
        o_ref[...] = jnp.dot(feat, w12_ref[...],
                             preferred_element_type=jnp.float32)


# ---------------------------------------------------------------------------
# Parameters
# ---------------------------------------------------------------------------
def make_params(key, in_features, num_classes=10):
    """Deterministic parameter init (shapes implied by the module __init__)."""
    k0, k1, k2, k3, k4, k5 = jax.random.split(key, 6)
    scale0 = 1.0 / jnp.sqrt(jnp.float32(in_features))
    scale1 = 1.0 / jnp.sqrt(jnp.float32(FEAT))
    scale2 = 1.0 / jnp.sqrt(jnp.float32(32))
    return {
        # surrogate backbone projection: flattened image -> 1000 "logits"
        "w0": jax.random.normal(k0, (in_features, FEAT), jnp.float32) * scale0,
        "b0": jax.random.normal(k1, (1, FEAT), jnp.float32) * 0.01,
        # ln1: Linear(1000, 32)
        "w1": jax.random.normal(k2, (FEAT, 32), jnp.float32) * scale1,
        "b1": jax.random.normal(k3, (1, 32), jnp.float32) * 0.01,
        # ln2: Linear(32, num_classes)
        "w2": jax.random.normal(k4, (FEAT, 32), jnp.float32)[:32, :num_classes] * 0,  # placeholder, replaced below
        "b2": jax.random.normal(k5, (1, num_classes), jnp.float32) * 0.01,
    } | {"w2": jax.random.normal(k4, (32, num_classes), jnp.float32) * scale2}


def pack_params(params, in_features, tk_max=TK_MAX):
    """One-time packing: pad / cast / fuse.  HOISTED out of the forward path
    (at real EfficientNet-B4 sizes the per-call pad+cast of w0 would move more
    HBM bytes than the kernel itself)."""
    num_classes = params["w2"].shape[1]
    cls_pad = _round_up(max(num_classes, 128), 128)

    # Contraction tile: one step for small inputs, capped at TK_MAX for large.
    tk = min(tk_max, _round_up(in_features, 256))
    f_pad = _round_up(in_features, tk)

    # Surrogate backbone weight / bias, zero-padded, bf16 weight.
    w0_p = jnp.pad(params["w0"],
                   ((0, f_pad - in_features), (0, FEAT_PAD - FEAT))
                   ).astype(jnp.bfloat16)
    b0_p = jnp.pad(params["b0"], ((0, 0), (0, FEAT_PAD - FEAT)))

    # Fuse ln1·ln2 (no nonlinearity between them) in f32, then cast to bf16.
    w12 = params["w1"] @ params["w2"]                     # [1000, C]
    b12 = params["b1"] @ params["w2"] + params["b2"]      # [1, C]
    w12_p = jnp.pad(w12, ((0, FEAT_PAD - FEAT),
                          (0, cls_pad - num_classes))).astype(jnp.bfloat16)
    b12_p = jnp.pad(b12, ((0, 0), (0, cls_pad - num_classes)))

    return {
        "w0": w0_p, "b0": b0_p, "w12": w12_p, "b12": b12_p,
        "in_features": in_features, "f_pad": f_pad, "tk": tk,
        "num_classes": num_classes, "cls_pad": cls_pad,
    }


# ---------------------------------------------------------------------------
# Forward
# ---------------------------------------------------------------------------
def classifier_forward(x_nchw, packed):
    """x_nchw: [B, C, H, W] float32 image batch (PyTorch NCHW convention)."""
    B = x_nchw.shape[0]
    f_in = packed["in_features"]
    f_pad, tk = packed["f_pad"], packed["tk"]
    cls_pad, num_classes = packed["cls_pad"], packed["num_classes"]

    x_flat = x_nchw.reshape(B, -1).astype(jnp.float32)
    assert x_flat.shape[1] == f_in, (x_flat.shape, f_in)
    x_p = jnp.pad(x_flat, ((0, 0), (0, f_pad - f_in))).astype(jnp.bfloat16)

    n_k = f_pad // tk
    cost = pl.CostEstimate(
        flops=2 * B * f_pad * FEAT_PAD + 2 * B * FEAT_PAD * cls_pad,
        transcendentals=0,
        bytes_accessed=(packed["w0"].size * 2                 # dominant stream
                        + N_CORES_SPLIT * x_p.size * 2
                        + packed["b0"].size * 4
                        + packed["w12"].size * 2
                        + N_CORES_SPLIT * B * cls_pad * 4),
    )

    # NOTE: at nontrivial batch (>= a few hundred rows) also add an M-tiled
    # "parallel" batch grid axis; at B=2 the feature-split axis below is the
    # only useful megacore lever.
    out_partial = pl.pallas_call(
        classifier_head_kernel,
        out_shape=jax.ShapeDtypeStruct((N_CORES_SPLIT, B, cls_pad),
                                       jnp.float32),
        grid_spec=pltpu.PrefetchScalarGridSpec(
            num_scalar_prefetch=0,
            grid=(N_CORES_SPLIT, n_k),
            in_specs=[
                pl.BlockSpec((B, tk), lambda c, k: (0, k)),            # x
                pl.BlockSpec((tk, FEAT_HALF), lambda c, k: (k, c)),    # w0
                pl.BlockSpec((1, FEAT_HALF), lambda c, k: (0, c)),     # b0
                pl.BlockSpec((FEAT_HALF, cls_pad), lambda c, k: (c, 0)),  # w12
            ],
            out_specs=pl.BlockSpec((None, B, cls_pad),
                                   lambda c, k: (c, 0, 0)),
            scratch_shapes=[pltpu.VMEM((B, FEAT_HALF), jnp.float32)],
        ),
        compiler_params=pltpu.CompilerParams(
            dimension_semantics=("parallel", "arbitrary")),
        cost_estimate=cost,
    )(x_p, packed["w0"], packed["b0"], packed["w12"])

    # Combine the two feature-half partials, add the fused bias, drop padding.
    logits_pad = out_partial.sum(axis=0) + packed["b12"]
    return logits_pad[:, :num_classes]


# ---------------------------------------------------------------------------
# References
# ---------------------------------------------------------------------------
def reference_forward_quantized(x_nchw, params):
    """Pure-JAX reference mirroring the kernel's bf16 operand quantization
    (x, w0, feat, fused w12 in bf16; f32 accumulation and biases)."""
    B = x_nchw.shape[0]
    x = x_nchw.reshape(B, -1).astype(jnp.float32)
    xq = x.astype(jnp.bfloat16).astype(jnp.float32)
    w0q = params["w0"].astype(jnp.bfloat16).astype(jnp.float32)
    feat = xq @ w0q + params["b0"]                        # dropout(eval) = id
    w12 = params["w1"] @ params["w2"]
    b12 = params["b1"] @ params["w2"] + params["b2"]
    featq = feat.astype(jnp.bfloat16).astype(jnp.float32)
    w12q = w12.astype(jnp.bfloat16).astype(jnp.float32)
    return featq @ w12q + b12


def reference_forward_f32(x_nchw, params):
    """Unfused full-f32 reference matching the original module math.  The
    kernel's bf16 operand quantization introduces a small, documented delta
    relative to this path."""
    B = x_nchw.shape[0]
    x = x_nchw.reshape(B, -1).astype(jnp.float32)
    feat = x @ params["w0"] + params["b0"]
    h = feat @ params["w1"] + params["b1"]                # dropout(eval) = id
    return h @ params["w2"] + params["b2"]


# ---------------------------------------------------------------------------
if __name__ == "__main__":
    key = jax.random.PRNGKey(0)
    k_x, k_p = jax.random.split(key)

    # Small image batch consistent with an NCHW conv-net input.
    B, C, H, W = 2, 3, 16, 16
    x = jax.random.normal(k_x, (B, C, H, W), jnp.float32)

    params = make_params(k_p, in_features=C * H * W, num_classes=10)
    packed = pack_params(params, in_features=C * H * W)   # one-time packing

    out = classifier_forward(x, packed)
    out = jax.block_until_ready(out)

    assert out.shape == (B, 10), out.shape

    # Tight check vs a reference with identical bf16 operand quantization.
    ref_q = reference_forward_quantized(x, params)
    assert jnp.allclose(out, ref_q, atol=2e-3, rtol=2e-3), (
        float(jnp.max(jnp.abs(out - ref_q))))

    # Looser sanity check vs the pure-f32 module math (bf16 quantization
    # delta is the only difference).
    ref_f = reference_forward_f32(x, params)
    assert jnp.allclose(out, ref_f, atol=8e-2, rtol=8e-2), (
        float(jnp.max(jnp.abs(out - ref_f))))

    print("KERNEL_OK")
</pallas_src>

<mosaic_0001>
module attributes {stable_mosaic.version = 11 : i64} {
  func.func @classifier_head_kernel(%arg0: i32, %arg1: i32, %arg2: memref<2x768xbf16, #tpu.memory_space<vmem>>, %arg3: memref<768x512xbf16, #tpu.memory_space<vmem>>, %arg4: memref<1x512xf32, #tpu.memory_space<vmem>>, %arg5: memref<512x128xbf16, #tpu.memory_space<vmem>>, %arg6: memref<1x2x128xf32, #tpu.memory_space<vmem>>, %arg7: memref<2x512xf32, #tpu.memory_space<vmem>>) attributes {dimension_semantics = [#tpu.dimension_semantics<parallel>, #tpu.dimension_semantics<arbitrary>], iteration_bounds = array<i64: 2, 1>, scalar_prefetch = 0 : i64, scratch_operands = 1 : i64, tpu.core_type = #tpu.core_type<tc>, window_params = [{transform_indices = @transform_0, window_bounds = array<i64: 2, 768>}, {transform_indices = @transform_1, window_bounds = array<i64: 768, 512>}, {transform_indices = @transform_2, window_bounds = array<i64: 1, 512>}, {transform_indices = @transform_3, window_bounds = array<i64: 512, 128>}, {transform_indices = @transform_4, window_bounds = array<i64: 1, 2, 128>}]} {
    %c0_i32 = arith.constant 0 : i32
    %0 = arith.cmpi eq, %arg1, %c0_i32 : i32
    %1 = arith.extui %0 : i1 to i32
    %c0_i32_0 = arith.constant 0 : i32
    %2 = arith.cmpi ne, %1, %c0_i32_0 : i32
    scf.if %2 {
      %cst_10 = arith.constant 0.000000e+00 : f32
      %12 = vector.broadcast %cst_10 : f32 to vector<2x512xf32>
      %c0_11 = arith.constant 0 : index
      %c0_12 = arith.constant 0 : index
      %13 = vector.load %arg7[%c0_11, %c0_12] : memref<2x512xf32, #tpu.memory_space<vmem>>, vector<2x512xf32>
      tpu.vector_store %arg7[%c0_11, %c0_12], %12 {strides = array<i32>} : memref<2x512xf32, #tpu.memory_space<vmem>>, vector<2x512xf32>,
    } else {
    }
    %c0 = arith.constant 0 : index
    %c0_1 = arith.constant 0 : index
    %3 = vector.load %arg7[%c0, %c0_1] : memref<2x512xf32, #tpu.memory_space<vmem>>, vector<2x512xf32>
    %c0_2 = arith.constant 0 : index
    %c0_3 = arith.constant 0 : index
    %4 = vector.load %arg2[%c0_2, %c0_3] : memref<2x768xbf16, #tpu.memory_space<vmem>>, vector<2x768xbf16>
    %c0_4 = arith.constant 0 : index
    %c0_5 = arith.constant 0 : index
    %5 = vector.load %arg3[%c0_4, %c0_5] : memref<768x512xbf16, #tpu.memory_space<vmem>>, vector<768x512xbf16>
    %cst = arith.constant dense<0.000000e+00> : vector<2x512xf32>
    %6 = tpu.matmul %4, %5, %cst {dimension_numbers = #tpu.dot_dimension_numbers<[1], [0], [0], [1], [0, 0, 1, 1], [], []>} : vector<2x768xbf16>, vector<768x512xbf16>, vector<2x512xf32> -> vector<2x512xf32>
    %7 = arith.addf %3, %6 : vector<2x512xf32>
    %c0_6 = arith.constant 0 : index
    %c0_7 = arith.constant 0 : index
    %8 = vector.load %arg7[%c0_6, %c0_7] : memref<2x512xf32, #tpu.memory_space<vmem>>, vector<2x512xf32>
    tpu.vector_store %arg7[%c0_6, %c0_7], %7 {strides = array<i32>} : memref<2x512xf32, #tpu.memory_space<vmem>>, vector<2x512xf32>,
    %c0_i32_8 = arith.constant 0 : i32
    %9 = arith.cmpi eq, %arg1, %c0_i32_8 : i32
    %10 = arith.extui %9 : i1 to i32
    %c0_i32_9 = arith.constant 0 : i32
    %11 = arith.cmpi ne, %10, %c0_i32_9 : i32
    scf.if %11 {
      %c0_10 = arith.constant 0 : index
      %c0_11 = arith.constant 0 : index
      %12 = vector.load %arg7[%c0_10, %c0_11] : memref<2x512xf32, #tpu.memory_space<vmem>>, vector<2x512xf32>
      %c0_12 = arith.constant 0 : index
      %c0_13 = arith.constant 0 : index
      %13 = vector.load %arg4[%c0_12, %c0_13] : memref<1x512xf32, #tpu.memory_space<vmem>>, vector<1x512xf32>
      %14 = vector.broadcast %13 : vector<1x512xf32> to vector<2x512xf32>
      %15 = arith.addf %12, %14 : vector<2x512xf32>
      %16 = arith.truncf %15 : vector<2x512xf32> to vector<2x512xbf16>
      %c0_14 = arith.constant 0 : index
      %c0_15 = arith.constant 0 : index
      %17 = vector.load %arg5[%c0_14, %c0_15] : memref<512x128xbf16, #tpu.memory_space<vmem>>, vector<512x128xbf16>
      %cst_16 = arith.constant dense<0.000000e+00> : vector<2x128xf32>
      %18 = tpu.matmul %16, %17, %cst_16 {dimension_numbers = #tpu.dot_dimension_numbers<[1], [0], [0], [1], [0, 0, 1, 1], [], []>} : vector<2x512xbf16>, vector<512x128xbf16>, vector<2x128xf32> -> vector<2x128xf32>
      %c0_17 = arith.constant 0 : index
      %c0_18 = arith.constant 0 : index
      %c0_19 = arith.constant 0 : index
      %19 = vector.load %arg6[%c0_17, %c0_18, %c0_19] : memref<1x2x128xf32, #tpu.memory_space<vmem>>, vector<1x2x128xf32>
      %20 = vector.shape_cast %19 : vector<1x2x128xf32> to vector<2x128xf32>
      %21 = vector.shape_cast %18 : vector<2x128xf32> to vector<1x2x128xf32>
      tpu.vector_store %arg6[%c0_17, %c0_18, %c0_19], %21 {strides = array<i32>} : memref<1x2x128xf32, #tpu.memory_space<vmem>>, vector<1x2x128xf32>,
    } else {
    }
    return
  }
  func.func @transform_0(%arg0: i32, %arg1: i32) -> (i32, i32) {
    %c0_i32 = arith.constant 0 : i32
    %c0_i32_0 = arith.constant 0 : i32
    return %c0_i32, %arg1 : i32, i32
  }
  func.func @transform_1(%arg0: i32, %arg1: i32) -> (i32, i32) {
    %c0_i32 = arith.constant 0 : i32
    return %arg1, %arg0 : i32, i32
  }
  func.func @transform_2(%arg0: i32, %arg1: i32) -> (i32, i32) {
    %c0_i32 = arith.constant 0 : i32
    %c0_i32_0 = arith.constant 0 : i32
    return %c0_i32, %arg0 : i32, i32
  }
  func.func @transform_3(%arg0: i32, %arg1: i32) -> (i32, i32) {
    %c0_i32 = arith.constant 0 : i32
    %c0_i32_0 = arith.constant 0 : i32
    return %arg0, %c0_i32 : i32, i32
  }
  func.func @transform_4(%arg0: i32, %arg1: i32) -> (i32, i32, i32) {
    %c0_i32 = arith.constant 0 : i32
    %c0_i32_0 = arith.constant 0 : i32
    %c0_i32_1 = arith.constant 0 : i32
    return %arg0, %c0_i32, %c0_i32_0 : i32, i32, i32
  }
}

</mosaic_0001>

<bundles_post_ra>
// kernel: tpu_custom_call.1
= control target key start
LH: loop header
LB: loop body
LE: loop exit
PB: predicated region body
PF: predicated region fallthrough
CT: control target
= control target key end

     0   :  { %s3886_s0 = inlined_call_operand.hbm [shape: bf16[2,768], index: 0, kind: input, shape index: {}]   ;;  %s3887_s1 = inlined_call_operand.hbm [shape: bf16[768,1024], index: 1, kind: input, shape index: {}]   ;;  %s3888_s2 = inlined_call_operand.hbm [shape: f32[1,1024], index: 2, kind: input, shape index: {}]   ;;  %s3889_s3 = inlined_call_operand.hbm [shape: bf16[1024,128], index: 3, kind: input, shape index: {}]   ;;  %s3890_s4 = inlined_call_operand.hbm [shape: f32[2,2,128], index: 4, kind: output, shape index: {}]  }
   0x1   :  { %3903 = sst [smem:[#allocation19_spill]] %s3887_s1 }
   0x2   :  { %9 = vsyncpa [#allocation4], 0 }
   0x3   :  { %10 = vsyncpa [#allocation7], 0 }
   0x4   :  { %12 = vsyncpa [#allocation7 + $0x1], 0 }
   0x5   :  { %13 = vsyncpa [#allocation10], 0 }
   0x6   :  { %15 = vsyncpa [#allocation10 + $0x1], 0 }
   0x7   :  { %16 = vsyncpa [#allocation5], 0 }
   0x8   :  { %18 = vsyncpa [#allocation5 + $0x1], 0  ;;  %s3343_s15 = smov 0   ;;  %s3345_s16 = smov 0  }
   0x9   :  { %s3347_s17 = smov 0   ;;  %s3349_s18 = smov 0  }
   0xa   :  { %s3351_s19 = smov 0   ;;  %s3353_s20 = smov 0  }
   0xb LB: > { %3904 = sst [smem:[#allocation16_spill]] %s3292_s17  ;;  %s36_s21 = sadd.s32 1, %s3300_s19  ;;  %s3304_s20 = sphi %s3353_s20, %s24_s20   ;;  %s3300_s19 = sphi %s3351_s19, %s3933_s19   ;;  %s3296_s18 = sphi %s3349_s18, %s3932_s18   ;;  %s3292_s17 = sphi %s3347_s17, %s3928_s17   ;;  %s3288_s16 = sphi %s3345_s16, %s3931_s16   ;;  %s3284_s15 = sphi %s3343_s15, %s3930_s15  }
   0xc   : > { %s71_s22 = sadd.s32 1, %s3292_s17  ;;  %p38_p0 = scmp.ge.s32.totalorder %s36_s21, 2 }
   0xd   : > { %p3891_p1 = scmp.ne.s32.totalorder %s3292_s17, %s3288_s16  ;;  %p79_p2 = scmp.eq.s32.totalorder %s3304_s20, 0 }
   0xe   : > { %s3935_s21 = smov (%p38_p0, %s36_s21), 0  ;;  %p2716_p5 = scmp.lt.s32.totalorder %s3304_s20, 2 }
   0xf   : > { %3905 = sst [smem:[#allocation17_spill]] %s3935_s21  ;;  %p80_p4 = por %p79_p2, %p3891_p1 }
  0x10   : > { %s67_s23 = ssub.s32 %s3300_s19, %s3935_s21  ;;  %s200_s24 = sand.u32 1, %s3304_s20  }
  0x11   : > { %p69_p6 = scmp.eq.s32.totalorder %s67_s23, 0  ;;  %s3389_s25 = sand.u32 1, %s3292_s17  }
  0x12   : > { %s2620_s26 = sshll.u32 %s3300_s19, 8  ;;  %s2683_s28 = smul.u32 1536, %s3389_s25 }
  0x13   : > { %s3393_s27 = scalar_select %p69_p6, %s3292_s17, %s71_s22  }
  0x14   : > { %s3907_s1 = sld [smem:[#allocation19_spill]]  ;;  %p3401_p7 = pnand %p2716_p5, %p80_p4 }
  0x15   : > { %3906 = sst [smem:[#allocation18_spill]] %s3393_s27  ;;  %s204_s7 = scalar_lea.vmem [#allocation6], %s2683_s28 }
  0x16   : > { %s3908_s6 = scalar_select %p3401_p7, 1, 0 }
  0x17   : > { %s214_s8 = sshll.u32 %s204_s7, 4  ;;  %s3407_s9 = scalar_lea.sflag [#allocation7], %s200_s24  ;;  %s3405_s8 = int_to_ptr.vmem [resolvable:$true] %s214_s8 }
  0x18   : > { %p3413_p9 = pneg %p3401_p7 }
  0x1a   : > { %s3399_s5 = scalar_lea.hbm %s3907_s1, %s2620_s26  ;;  %s3101_s14 = scalar_lea.hbm %s3907_s1, 49152 }
  0x1b   : > { %s3096_s10 = scalar_lea.hbm %s3399_s5, 24576  ;;  %p3102_p12 = scmp.lt.u32.totalorder %s3399_s5, %s3907_s1 }
  0x1c   : > { %p3097_p8 = scmp.ne.s32.totalorder %s3399_s5, %s3096_s10  ;;  %p3103_p13 = scmp.lt.u32.totalorder %s3101_s14, %s3096_s10 }
  0x1d   : > { %s3909_s11 = scalar_select %p3413_p9, 1, 0 }
  0x1e   : > { %p3099_p10 = pnand %p3413_p9, %p3097_p8  ;;  %p3104_p0 = por %p3103_p13, %p3102_p12 }
  0x1f   : > { %p3105_p2 = scmp.lt.u32.totalorder %s3096_s10, %s3399_s5 }
  0x20   : > { %p3100_p11 = pneg %p3099_p10 }
  0x21   : > { %p3106_p4 = por %p3105_p2, %p3104_p0 }
  0x23   : > { %p3107_p5 = pnand %p3106_p4, %p3100_p11 }
  0x25   : > { %3110 = shalt.err (!%p3107_p5)
}
  0x26   : > { %s3111_s24 = scalar_lea.vmem %s3405_s8, 24576  ;;  %s3306_s26 = smov [#allocation6]  }
  0x27   : > { %p3112_p6 = scmp.ne.s32.totalorder %s3405_s8, %s3111_s24  ;;  %s3116_s28 = sshll.u32 %s3306_s26, 4  ;;  %s3117_s28 = int_to_ptr.vmem [resolvable:$false] %s3116_s28 }
  0x28   : > { %s3118_s29 = scalar_lea.vmem %s3117_s28, 49152  ;;  %p3119_p3 = scmp.lt.s32.totalorder %s3405_s8, %s3117_s28 }
  0x29   : > { %p3114_p8 = pnand %p3112_p6, %p3413_p9  ;;  %p3120_p1 = scmp.lt.s32.totalorder %s3118_s29, %s3111_s24 }
  0x2b   : > { %p3115_p10 = pneg %p3114_p8  ;;  %p3121_p12 = por %p3120_p1, %p3119_p3 }
  0x2d   : > { %p3122_p13 = pnand %p3121_p12, %p3115_p10 }
  0x2f   : > { %3125 = shalt.err (!%p3122_p13)
}
  0x30   : > { %s3307_s30 = smov 512   ;;  %s3308_s7 = smov 256  }
  0x31   : > { %s3309_s10 = smov 16   ;;  %s3438_s12 = sadd.s32 4294967295, %s3304_s20  }
  0x32   : > { %2704 = dma.hbm_to_vmem [thread:$0]  (!%p3401_p7), %s3399_s5, 24576, %s3405_s8, %s3407_s9, %s3307_s30, %s3308_s7, %s3309_s10  }
  0x33   : > { %s2375_s13 = sadd.s32 4294967294, %s3304_s20   ;;  %p84_p1 = scmp.ne.s32.totalorder %s3288_s16, %s3284_s15 }
  0x34   : > { %p3893_p3 = scmp.eq.s32.totalorder %s3438_s12, 0  ;;  %p160_p11 = scmp.eq.s32.totalorder %s3438_s12, 1 }
  0x35   : > { %p166_p0 = scmp.eq.s32.totalorder %s2375_s13, 1  ;;  %p2376_p4 = scmp.ge.s32.totalorder %s3304_s20, 1 }
  0x36   : > { %p3447_p2 = por %p3893_p3, %p84_p1  ;;  %p3911_p5 = scmp.ne.s32.totalorder %s3292_s17, %s3288_s16 }
  0x37   : > { %p3459_p8 = por %p166_p0, %p84_p1  ;;  %p173_p10 = scmp.lt.s32.totalorder %s3304_s20, 3 }
  0x38   : > { %s3910_s14 = scalar_select %p3447_p2, 1, 0 }
  0x39   : > { %p3455_p6 = por %p160_p11, %p3911_p5  ;;  %s2381_s22 = sshll.u32 %s3389_s25, 2 }
  0x3a   : > { %s3913_s8 = scalar_select %p3459_p8, 1, 0 }
  0x3b   : > { %s3912_s5 = scalar_select %p3455_p6, 1, 0 }
  0x3c   : > { %p3465_p12 = pnand %p2376_p4, %p173_p10  ;;  %s3310_s24 = smov [#allocation3]  }
  0x3d   : > { %s189_s26 = sshll.u32 %s3310_s24, 4  ;;  %s2621_s28 = sshll.u32 %s3300_s19, 6  ;;  %s3469_s26 = int_to_ptr.vmem [resolvable:$true] %s189_s26 }
  0x3e   : > { %s3914_s23 = scalar_select %p3465_p12, 1, 0 }
  0x3f   : > { %p2697_p13 = pneg %p3465_p12  ;;  %s3477_s7 = scalar_lea.hbm %s3888_s2, %s2621_s28 }
  0x40   : > { %s228_s10 = scalar_lea.vmem [#allocation8], %s2381_s22  ;;  %s3126_s24 = scalar_lea.hbm %s3477_s7, 64 }
  0x41   : > { %s236_s13 = sshll.u32 %s228_s10, 4  ;;  %p3481_p1 = pnand %p2697_p13, %p3893_p3  ;;  %s237_s13 = int_to_ptr.vmem [resolvable:$true] %s236_s13 }
  0x42   : > { %p3127_p11 = scmp.ne.s32.totalorder %s3477_s7, %s3126_s24  ;;  %s3131_s30 = scalar_lea.hbm %s3888_s2, 128 }
  0x43   : > { %s3915_s1 = scalar_select %p3481_p1, 1, 0 }
  0x44   : > { %p3129_p0 = pnand %p3127_p11, %p3413_p9  ;;  %p3132_p5 = scmp.lt.u32.totalorder %s3477_s7, %s3888_s2 }
  0x45   : > { %p3133_p10 = scmp.lt.u32.totalorder %s3131_s30, %s3126_s24  ;;  %p3135_p13 = scmp.lt.u32.totalorder %s3126_s24, %s3477_s7 }
  0x46   : > { %p3130_p4 = pneg %p3129_p0 }
  0x47   : > { %p3134_p8 = por %p3133_p10, %p3132_p5 }
  0x49   : > { %p3136_p3 = por %p3135_p13, %p3134_p8 }
  0x4b   : > { %p3137_p6 = pnand %p3136_p3, %p3130_p4 }
  0x4d   : > { %3140 = shalt.err (!%p3137_p6)
}
  0x4e   : > { %s3141_s22 = scalar_lea.vmem %s237_s13, 64  ;;  %s3311_s10 = smov [#allocation8]  }
  0x4f   : > { %p3142_p2 = scmp.ne.s32.totalorder %s237_s13, %s3141_s22  ;;  %s3146_s17 = sshll.u32 %s3311_s10, 4  ;;  %s3147_s17 = int_to_ptr.vmem [resolvable:$false] %s3146_s17 }
  0x50   : > { %s3148_s29 = scalar_lea.vmem %s3147_s17, 128  ;;  %p3149_p12 = scmp.lt.s32.totalorder %s237_s13, %s3147_s17 }
  0x51   : > { %p3144_p11 = pnand %p3142_p2, %p3413_p9  ;;  %p3150_p1 = scmp.lt.s32.totalorder %s3148_s29, %s3141_s22 }
  0x53   : > { %p3145_p0 = pneg %p3144_p11  ;;  %p3151_p7 = por %p3150_p1, %p3149_p12 }
  0x55   : > { %p3152_p5 = pnand %p3151_p7, %p3145_p0 }
  0x57   : > { %3155 = shalt.err (!%p3152_p5)
}
  0x58   : > { %p3916_p10 = scmp.ne.s32.totalorder %s3908_s6, 0  ;;  %s3156_s24 = scalar_lea.hbm %s3886_s0, 96 }
  0x59   : > { %p3157_p3 = scmp.ne.s32.totalorder %s3886_s0, %s3156_s24  ;;  %p3917_p2 = scmp.ne.s32.totalorder %s3915_s1, 0 }
  0x5a   : > { %2707 = dma.hbm_to_vmem [thread:$0]  (!%p3916_p10), %s3477_s7, 64, %s237_s13, %s3407_s9  }
  0x5b   : > { %p3158_p6 = pneg %p3917_p2  ;;  %p3163_p7 = scmp.lt.u32.totalorder %s3156_s24, %s3886_s0 }
  0x5d   : > { %p3159_p8 = pnand %p3158_p6, %p3157_p3 }
  0x5f   : > { %p3160_p12 = pneg %p3159_p8 }
  0x61   : > { %p3165_p1 = pnand %p3163_p7, %p3160_p12 }
  0x63   : > { %3168 = shalt.err (!%p3165_p1)
}
  0x64   : > { %s3169_s9 = scalar_lea.vmem %s3469_s26, 96  ;;  %p3177_p0 = scmp.lt.s32.totalorder %s3469_s26, %s3469_s26 }
  0x65   : > { %p3170_p4 = scmp.ne.s32.totalorder %s3469_s26, %s3169_s9  ;;  %p3178_p5 = scmp.lt.s32.totalorder %s3169_s9, %s3169_s9 }
  0x67   : > { %p3172_p13 = pnand %p3170_p4, %p3158_p6  ;;  %p3179_p10 = por %p3178_p5, %p3177_p0 }
  0x69   : > { %p3173_p11 = pneg %p3172_p13 }
  0x6b   : > { %p3180_p9 = pnand %p3179_p10, %p3173_p11 }
  0x6d   : > { %3183 = shalt.err (!%p3180_p9)
}
  0x6e   : > { %2700 = dma.hbm_to_vmem [thread:$0]  (!%p3917_p2), %s3886_s0, 96, %s3469_s26, [#allocation4]  }
  0x6f   : > { %s2384_s10 = sshll.u32 %s3389_s25, 8  ;;  %s2622_s29 = sshll.u32 %s3300_s19, 12 }
  0x70   : > { %s3529_s24 = scalar_lea.hbm %s3889_s3, %s2622_s29  ;;  %s247_s1 = scalar_lea.vmem [#allocation9], %s2384_s10 }
  0x71   : > { %s254_s28 = sshll.u32 %s247_s1, 4  ;;  %s244_s30 = scalar_lea.sflag [#allocation10], %s3389_s25  ;;  %s3531_s28 = int_to_ptr.vmem [resolvable:$true] %s254_s28 }
  0x72   : > { %s3184_s17 = scalar_lea.hbm %s3529_s24, 4096  ;;  %p3918_p10 = scmp.ne.s32.totalorder %s3909_s11, 0 }
  0x73   : > { %p3185_p9 = scmp.ne.s32.totalorder %s3529_s24, %s3184_s17  ;;  %s3189_s9 = scalar_lea.hbm %s3889_s3, 8192 }
  0x74   : > { %p3190_p6 = scmp.lt.u32.totalorder %s3529_s24, %s3889_s3  ;;  %p3191_p8 = scmp.lt.u32.totalorder %s3189_s9, %s3184_s17 }
  0x75   : > { %p3187_p3 = pnand %p3185_p9, %p3918_p10  ;;  %p3193_p7 = scmp.lt.u32.totalorder %s3184_s17, %s3529_s24 }
  0x76   : > { %p3192_p12 = por %p3191_p8, %p3190_p6 }
  0x77   : > { %p3188_p2 = pneg %p3187_p3 }
  0x78   : > { %p3194_p1 = por %p3193_p7, %p3192_p12 }
  0x7a   : > { %p3195_p4 = pnand %p3194_p1, %p3188_p2 }
  0x7c   : > { %3198 = shalt.err (!%p3195_p4)
}
  0x7d   : > { %s3199_s10 = scalar_lea.vmem %s3531_s28, 4096  ;;  %s3312_s29 = smov [#allocation9]  }
  0x7e   : > { %p3200_p13 = scmp.ne.s32.totalorder %s3531_s28, %s3199_s10  ;;  %s3204_s21 = sshll.u32 %s3312_s29, 4  ;;  %s3205_s21 = int_to_ptr.vmem [resolvable:$false] %s3204_s21 }
  0x7f   : > { %s3206_s27 = scalar_lea.vmem %s3205_s21, 8192  ;;  %p3207_p5 = scmp.lt.s32.totalorder %s3531_s28, %s3205_s21 }
  0x80   : > { %p3202_p11 = pnand %p3200_p13, %p3918_p10  ;;  %p3208_p9 = scmp.lt.s32.totalorder %s3206_s27, %s3199_s10 }
  0x82   : > { %p3203_p0 = pneg %p3202_p11  ;;  %p3209_p3 = por %p3208_p9, %p3207_p5 }
  0x84   : > { %p3210_p6 = pnand %p3209_p3, %p3203_p0 }
  0x86   : > { %3213 = shalt.err (!%p3210_p6)
}
  0x87   : > { %s3313_s1 = smov 64   ;;  %s3314_s17 = smov 4  }
  0x88   : > { %p3919_p2 = scmp.ne.s32.totalorder %s3908_s6, 0  ;;  %p3920_p10 = scmp.ne.s32.totalorder %s3914_s23, 0 }
  0x89   : > { %p3921_p8 = scmp.eq.s32.totalorder (!%p3920_p10), %s3438_s12, 0 }
  0x8a   : > { %2710 = dma.hbm_to_vmem [thread:$0]  (!%p3919_p2), %s3529_s24, 4096, %s3531_s28, %s244_s30, %s3313_s1, %s3313_s1, %s3314_s17  }
  0x8b   : > { %266 = sbr.rel (%p3920_p10) target bundleno = 810 (0x32a), region = 36 }
  0x92   : > { %3267 = dma.done.wait (%p3921_p8), [#allocation4], 96   ;;  %p3922_p12 = pmov %p3921_p8 }
  0x93   : > { %s272_s11 = sand.u32 1, %s3438_s12   ;;  %s3565_s26 = sand.u32 1, %s3288_s16  }
  0x94   : > { %3269 = vsyncadd (%p3922_p12), [#allocation4], 4294967200  ;;  %s2684_s22 = smul.u32 1536, %s3565_s26  ;;  %s273_s6 = scalar_lea.sflag [#allocation7], %s272_s11 }
  0x95   : > { %p3923_p7 = scmp.ne.s32.totalorder %s3910_s14, 0 }
  0x96   : > { %s3568_s25 = scalar_lea.vmem [#allocation6], %s2684_s22 }
  0x97   : > { %3271 = dma.done.wait (%p3923_p7), %s273_s6, 24640  }
  0x98   : > { %3273 = vsyncadd (%p3923_p7), %s273_s6, 4294942656  ;;  %s2389_s23 = sshll.u32 %s3565_s26, 2  ;;  %s2390_s24 = sshll.u32 %s3565_s26, 8 }
  0x99   : > { %s3576_s28 = scalar_lea.vmem [#allocation8], %s2389_s23  ;;  %s291_s12 = scalar_lea.sflag [#allocation10], %s3565_s26 }
  0x9a   : > { %s3579_s30 = scalar_lea.vmem [#allocation9], %s2390_s24 }
  0x9b   : > { %3275 = dma.done.wait (%p3923_p7), %s291_s12, 4096  }
  0x9c   : > { %3277 = vsyncadd (%p3923_p7), %s291_s12, 4294963200  ;;  %v2775_v0 = vld [vmem:[%s3568_s25 + $0x4] ss:$16 sps:$4 sm:$0xff]   ;;  %v2777_v1 = vld [vmem:[%s3568_s25 + $0xc] ss:$16 sps:$4 sm:$0xff]   ;;  %v539_v38 = vlaneseq  ;;  %s2391_s14 = sshll.u32 %s3565_s26, 1 }
  0x9d   : > { %1548 = vmatprep.subr.bf16.mxu0 %v2775_v0  ;;  %v2779_v2 = vld [vmem:[%s3568_s25] ss:$16 sps:$4 sm:$0xff]   ;;  %v2780_v3 = vld [vmem:[%s3568_s25 + $0x8] ss:$16 sps:$4 sm:$0xff]   ;;  %1671 = vmatprep.subr.bf16.mxu1 %v2777_v1  ;;  %v2781_v4 = vld [vmem:[%s3568_s25 + $0x24] ss:$16 sps:$4 sm:$0xff]  }
  0x9e   : > { %1549 = vmatpush1.bf16.msra.mxu0 %v2779_v2  ;;  %1672 = vmatpush1.bf16.msra.mxu1 %v2780_v3  ;;  %v2783_v5 = vld [vmem:[%s3568_s25 + $0x2c] ss:$16 sps:$4 sm:$0xff]   ;;  %v2785_v6 = vld [vmem:[%s3568_s25 + $0x20] ss:$16 sps:$4 sm:$0xff]   ;;  %v2786_v7 = vld [vmem:[%s3568_s25 + $0x28] ss:$16 sps:$4 sm:$0xff]  }
  0x9f   : > { %1550 = vmatprep.subr.bf16.mxu0 %v2781_v4  ;;  %1673 = vmatprep.subr.bf16.mxu1 %v2783_v5  ;;  %v2787_v8 = vld [vmem:[%s3568_s25 + $0x44] ss:$16 sps:$4 sm:$0xff]   ;;  %v2789_v9 = vld [vmem:[%s3568_s25 + $0x4c] ss:$16 sps:$4 sm:$0xff]   ;;  %v2791_v10 = vld [vmem:[%s3568_s25 + $0x40] ss:$16 sps:$4 sm:$0xff]  }
  0xa0   : > { %v2792_v11 = vld [vmem:[%s3568_s25 + $0x48] ss:$16 sps:$4 sm:$0xff]   ;;  %v2793_v12 = vld [vmem:[%s3568_s25 + $0x64] ss:$16 sps:$4 sm:$0xff]   ;;  %v2795_v13 = vld [vmem:[%s3568_s25 + $0x6c] ss:$16 sps:$4 sm:$0xff]  }
  0xa1   : > { %v2797_v14 = vld [vmem:[%s3568_s25 + $0x60] ss:$16 sps:$4 sm:$0xff]   ;;  %v2798_v15 = vld [vmem:[%s3568_s25 + $0x68] ss:$16 sps:$4 sm:$0xff]   ;;  %v2799_v16 = vld [vmem:[%s3568_s25 + $0x84] ss:$16 sps:$4 sm:$0xff]  }
  0xa2   : > { %1551 = vmatpush1.bf16.msra.mxu0 %v2785_v6  ;;  %1674 = vmatpush1.bf16.msra.mxu1 %v2786_v7  ;;  %v2801_v17 = vld [vmem:[%s3568_s25 + $0x8c] ss:$16 sps:$4 sm:$0xff]   ;;  %v2803_v18 = vld [vmem:[%s3568_s25 + $0x80] ss:$16 sps:$4 sm:$0xff]   ;;  %v2804_v19 = vld [vmem:[%s3568_s25 + $0x88] ss:$16 sps:$4 sm:$0xff]  }
  0xa3   : > { %1552 = vmatprep.subr.bf16.mxu0 %v2787_v8  ;;  %1675 = vmatprep.subr.bf16.mxu1 %v2789_v9  ;;  %v2805_v20 = vld [vmem:[%s3568_s25 + $0xa4] ss:$16 sps:$4 sm:$0xff]   ;;  %v2807_v21 = vld [vmem:[%s3568_s25 + $0xac] ss:$16 sps:$4 sm:$0xff]   ;;  %v2809_v22 = vld [vmem:[%s3568_s25 + $0xa0] ss:$16 sps:$4 sm:$0xff]  }
  0xa4   : > { %v2810_v23 = vld [vmem:[%s3568_s25 + $0xa8] ss:$16 sps:$4 sm:$0xff]   ;;  %v2811_v24 = vld [vmem:[%s3568_s25 + $0xc4] ss:$16 sps:$4 sm:$0xff]   ;;  %v2813_v25 = vld [vmem:[%s3568_s25 + $0xcc] ss:$16 sps:$4 sm:$0xff]  }
  0xa5   : > { %v2815_v26 = vld [vmem:[%s3568_s25 + $0xc0] ss:$16 sps:$4 sm:$0xff]   ;;  %v2816_v27 = vld [vmem:[%s3568_s25 + $0xc8] ss:$16 sps:$4 sm:$0xff]   ;;  %v2817_v28 = vld [vmem:[%s3568_s25 + $0xe4] ss:$16 sps:$4 sm:$0xff]  }
  0xa6   : > { %1553 = vmatpush1.bf16.msra.mxu0 %v2791_v10  ;;  %1676 = vmatpush1.bf16.msra.mxu1 %v2792_v11  ;;  %v2819_v29 = vld [vmem:[%s3568_s25 + $0xec] ss:$16 sps:$4 sm:$0xff]   ;;  %v2821_v30 = vld [vmem:[%s3568_s25 + $0xe0] ss:$16 sps:$4 sm:$0xff]   ;;  %v2822_v31 = vld [vmem:[%s3568_s25 + $0xe8] ss:$16 sps:$4 sm:$0xff]  }
  0xa7   : > { %1554 = vmatprep.subr.bf16.mxu0 %v2793_v12  ;;  %1677 = vmatprep.subr.bf16.mxu1 %v2795_v13  ;;  %v2823_v32 = vld [vmem:[%s3568_s25 + $0x104] ss:$16 sps:$4 sm:$0xff]   ;;  %v2825_v33 = vld [vmem:[%s3568_s25 + $0x10c] ss:$16 sps:$4 sm:$0xff]   ;;  %v2827_v34 = vld [vmem:[%s3568_s25 + $0x100] ss:$16 sps:$4 sm:$0xff]  }
  0xa8   : > { %v2828_v35 = vld [vmem:[%s3568_s25 + $0x108] ss:$16 sps:$4 sm:$0xff]   ;;  %v3315_v36 = vmov 1966171168   ;;  %v2829_v39 = vld [vmem:[%s3568_s25 + $0x124] ss:$16 sps:$4 sm:$0xff]  }
  0xa9   : > { %v537_v37 = vunpack.c.l.s4 %v3315_v36  ;;  %v2831_v40 = vld [vmem:[%s3568_s25 + $0x12c] ss:$16 sps:$4 sm:$0xff]   ;;  %v2833_v41 = vld [vmem:[%s3568_s25 + $0x120] ss:$16 sps:$4 sm:$0xff]   ;;  %v3624_v43 = vshrl.u32 %v539_v38, 7  ;;  %s2617_s9 = sshll.u32 %s3296_s18, 5 }
  0xaa   : > { %1555 = vmatpush1.bf16.msra.mxu0 %v2797_v14  ;;  %1678 = vmatpush1.bf16.msra.mxu1 %v2798_v15  ;;  %v2834_v44 = vld [vmem:[%s3568_s25 + $0x128] ss:$16 sps:$4 sm:$0xff]   ;;  %v2835_v45 = vld [vmem:[%s3568_s25 + $0x144] ss:$16 sps:$4 sm:$0xff]   ;;  %v2837_v46 = vld [vmem:[%s3568_s25 + $0x14c] ss:$16 sps:$4 sm:$0xff]   ;;  %s3837_s21 = scalar_lea.hbm %s3890_s4, %s2617_s9 }
  0xab   : > { %1556 = vmatprep.subr.bf16.mxu0 %v2799_v16  ;;  %1679 = vmatprep.subr.bf16.mxu1 %v2801_v17  ;;  %v538_v42 = vunpack.c.0.s8 %v537_v37  ;;  %v2839_v47 = vld [vmem:[%s3568_s25 + $0x140] ss:$16 sps:$4 sm:$0xff]   ;;  %v2840_v48 = vld [vmem:[%s3568_s25 + $0x148] ss:$16 sps:$4 sm:$0xff]   ;;  %v2841_v50 = vld [vmem:[%s3568_s25 + $0x164] ss:$16 sps:$4 sm:$0xff]  }
  0xac   : > { %v2843_v51 = vld [vmem:[%s3568_s25 + $0x16c] ss:$16 sps:$4 sm:$0xff]   ;;  %v2845_v53 = vld [vmem:[%s3568_s25 + $0x160] ss:$16 sps:$4 sm:$0xff]   ;;  %v2846_v55 = vld [vmem:[%s3568_s25 + $0x168] ss:$16 sps:$4 sm:$0xff]  }
  0xad   : > { %v541_v49 = vsub.s32 %v538_v42, %v3624_v43  ;;  %v341_v52 = vld [vmem:[#allocation3] sm:$0x3f]  ;;  %v2847_v56 = vld [vmem:[%s3568_s25 + $0x184] ss:$16 sps:$4 sm:$0xff]   ;;  %v2851_v59 = vld [vmem:[%s3568_s25 + $0x180] ss:$16 sps:$4 sm:$0xff]  }
  0xae   : > { %1557 = vmatpush1.bf16.msra.mxu0 %v2803_v18  ;;  %1680 = vmatpush1.bf16.msra.mxu1 %v2804_v19  ;;  %v2849_v57 = vld [vmem:[%s3568_s25 + $0x18c] ss:$16 sps:$4 sm:$0xff]   ;;  %v2852_v61 = vld [vmem:[%s3568_s25 + $0x188] ss:$16 sps:$4 sm:$0xff]   ;;  %v2853_v62 = vld [vmem:[%s3568_s25 + $0x1a4] ss:$16 sps:$4 sm:$0xff]   ;;  %v535_v8 = vcombine.high %v341_v52, %v341_v52 }
  0xaf   : > { %1558 = vmatprep.subr.bf16.mxu0 %v2805_v20  ;;  %1681 = vmatprep.subr.bf16.mxu1 %v2807_v21  ;;  %v542_v54 = vrot.slane %v341_v52, %v541_v49  ;;  %v2855_v63 = vld [vmem:[%s3568_s25 + $0x1ac] ss:$16 sps:$4 sm:$0xff]   ;;  %v2857_v0 = vld [vmem:[%s3568_s25 + $0x1a0] ss:$16 sps:$4 sm:$0xff]   ;;  %v2858_v1 = vld [vmem:[%s3568_s25 + $0x1a8] ss:$16 sps:$4 sm:$0xff]  }
  0xb0   : > { %v2859_v2 = vld [vmem:[%s3568_s25 + $0x1c4] ss:$16 sps:$4 sm:$0xff]   ;;  %v2861_v3 = vld [vmem:[%s3568_s25 + $0x1cc] ss:$16 sps:$4 sm:$0xff]   ;;  %v2863_v4 = vld [vmem:[%s3568_s25 + $0x1c0] ss:$16 sps:$4 sm:$0xff]   ;;  %v549_v11 = vrot.slane %v535_v8, %v541_v49 }
  0xb1   : > { %v550_v58 = vcombine.high %v542_v54, %v542_v54  ;;  %v2864_v5 = vld [vmem:[%s3568_s25 + $0x1c8] ss:$16 sps:$4 sm:$0xff]   ;;  %v2865_v6 = vld [vmem:[%s3568_s25 + $0x1e4] ss:$16 sps:$4 sm:$0xff]   ;;  %v2867_v7 = vld [vmem:[%s3568_s25 + $0x1ec] ss:$16 sps:$4 sm:$0xff]   ;;  %v3655_v16 = vrot.slane %v542_v54, %v541_v49 }
  0xb2   : > { %1559 = vmatpush1.bf16.msra.mxu0 %v2809_v22  ;;  %1682 = vmatpush1.bf16.msra.mxu1 %v2810_v23  ;;  %v2869_v9 = vld [vmem:[%s3568_s25 + $0x1e0] ss:$16 sps:$4 sm:$0xff]   ;;  %v2870_v10 = vld [vmem:[%s3568_s25 + $0x1e8] ss:$16 sps:$4 sm:$0xff]   ;;  %v2873_v12 = vld [vmem:[%s3568_s25 + $0x204] ss:$16 sps:$4 sm:$0xff]   ;;  %v551_v14 = vcombine.high %v549_v11, %v549_v11  ;;  %v3660_v19 = vrot.slane %v549_v11, %v541_v49 }
  0xb3   : > { %1560 = vmatprep.subr.bf16.mxu0 %v2811_v24  ;;  %1683 = vmatprep.subr.bf16.mxu1 %v2813_v25  ;;  %v572_v60 = vrot.slane %v550_v58, %v541_v49  ;;  %v2876_v13 = vld [vmem:[%s3568_s25 + $0x20c] ss:$16 sps:$4 sm:$0xff]   ;;  %v2871_v15 = vld [vmem:[%s3568_s25 + $0x200] ss:$16 sps:$4 sm:$0xff]   ;;  %v2874_v17 = vld [vmem:[%s3568_s25 + $0x208] ss:$16 sps:$4 sm:$0xff]  }
  0xb4   : > { %v3658_v18 = vrot.slane %v551_v14, %v541_v49  ;;  %v2879_v20 = vld [vmem:[%s3568_s25 + $0x224] ss:$16 sps:$4 sm:$0xff]   ;;  %v2882_v21 = vld [vmem:[%s3568_s25 + $0x22c] ss:$16 sps:$4 sm:$0xff]   ;;  %v2877_v23 = vld [vmem:[%s3568_s25 + $0x220] ss:$16 sps:$4 sm:$0xff]  }
  0xb5   : > { %1580 = vmatprep.mubr.bf16.mxu0 %v572_v60  ;;  %1703 = vmatprep.mubr.bf16.mxu1 %v572_v60  ;;  %v581_v22 = vcombine.high %v572_v60, %v572_v60  ;;  %v2880_v24 = vld [vmem:[%s3568_s25 + $0x228] ss:$16 sps:$4 sm:$0xff]   ;;  %v2885_v25 = vld [vmem:[%s3568_s25 + $0x244] ss:$16 sps:$4 sm:$0xff]   ;;  %v2906_v38 = vld [vmem:[%s3568_s25 + $0x2ac] ss:$16 sps:$4 sm:$0xff]  }
  0xb6   : > { %1561 = vmatpush1.bf16.msra.mxu0 %v2815_v26  ;;  %1684 = vmatpush1.bf16.msra.mxu1 %v2816_v27  ;;  %v2888_v26 = vld [vmem:[%s3568_s25 + $0x24c] ss:$16 sps:$4 sm:$0xff]   ;;  %v2883_v27 = vld [vmem:[%s3568_s25 + $0x240] ss:$16 sps:$4 sm:$0xff]   ;;  %v2898_v36 = vld [vmem:[%s3568_s25 + $0x288] ss:$16 sps:$4 sm:$0xff]  }
  0xb7   : > { %1562 = vmatprep.subr.bf16.mxu0 %v2817_v28  ;;  %1685 = vmatprep.subr.bf16.mxu1 %v2819_v29  ;;  %v2886_v28 = vld [vmem:[%s3568_s25 + $0x248] ss:$16 sps:$4 sm:$0xff]   ;;  %v2891_v29 = vld [vmem:[%s3568_s25 + $0x264] ss:$16 sps:$4 sm:$0xff]   ;;  %v2912_v42 = vld [vmem:[%s3568_s25 + $0x2cc] ss:$16 sps:$4 sm:$0xff]  }
  0xb8   : > { %v2903_v37 = vld [vmem:[%s3568_s25 + $0x2a4] ss:$16 sps:$4 sm:$0xff]   ;;  %v2916_v49 = vld [vmem:[%s3568_s25 + $0x2e8] ss:$16 sps:$4 sm:$0xff]   ;;  %v2919_v52 = vld [vmem:[%s3568_s25 + $0x300] ss:$16 sps:$4 sm:$0xff]  }
  0xb9   : > { %v2927_v54 = vld [vmem:[%s3568_s25 + $0x324] ss:$16 sps:$4 sm:$0xff]   ;;  %v2931_v60 = vld [vmem:[%s3568_s25 + $0x340] ss:$16 sps:$4 sm:$0xff]   ;;  %v2960_v11 = vld [vmem:[%s3568_s25 + $0x3cc] ss:$16 sps:$4 sm:$0xff]  }
  0xba   : > { %1563 = vmatpush1.bf16.msra.mxu0 %v2821_v30  ;;  %1686 = vmatpush1.bf16.msra.mxu1 %v2822_v31  ;;  %v2894_v30 = vld [vmem:[%s3568_s25 + $0x26c] ss:$16 sps:$4 sm:$0xff]   ;;  %v2889_v31 = vld [vmem:[%s3568_s25 + $0x260] ss:$16 sps:$4 sm:$0xff]   ;;  %v2933_v58 = vld [vmem:[%s3568_s25 + $0x344] ss:$16 sps:$4 sm:$0xff]  }
  0xbb   : > { %1564 = vmatprep.subr.bf16.mxu0 %v2823_v32  ;;  %1687 = vmatprep.subr.bf16.mxu1 %v2825_v33  ;;  %v2892_v32 = vld [vmem:[%s3568_s25 + $0x268] ss:$16 sps:$4 sm:$0xff]   ;;  %v2897_v33 = vld [vmem:[%s3568_s25 + $0x284] ss:$16 sps:$4 sm:$0xff]   ;;  %v2949_v8 = vld [vmem:[%s3568_s25 + $0x3a0] ss:$16 sps:$4 sm:$0xff]  }
  0xbc   : > { %v2963_v14 = vld [vmem:[%s3568_s25 + $0x3e4] ss:$16 sps:$4 sm:$0xff]   ;;  %s328_s7 = scalar_lea.vmem [#allocation11], %s2391_s14  ;;  %s2223_s27 = scalar_lea.sflag [#allocation5], %s3565_s26 }
  0xbd   : > { %s2236_s13 = sshll.u32 %s328_s7, 4  ;;  %p3924_p4 = scmp.ne.s32.totalorder %s3912_s5, 0  ;;  %s3839_s13 = int_to_ptr.vmem [resolvable:$true] %s2236_s13 }
  0xbe   : > { %1565 = vmatpush1.bf16.msra.mxu0 %v2827_v34  ;;  %1688 = vmatpush1.bf16.msra.mxu1 %v2828_v35  ;;  %v2900_v34 = vld [vmem:[%s3568_s25 + $0x28c] ss:$16 sps:$4 sm:$0xff]   ;;  %v2895_v35 = vld [vmem:[%s3568_s25 + $0x280] ss:$16 sps:$4 sm:$0xff]   ;;  %s3214_s1 = scalar_lea.vmem %s3839_s13, 32  ;;  %s3317_s18 = smov [#allocation11]  }
  0xbf   : > { %1566 = vmatprep.subr.bf16.mxu0 %v2829_v39  ;;  %1689 = vmatprep.subr.bf16.mxu1 %v2831_v40  ;;  %v2901_v39 = vld [vmem:[%s3568_s25 + $0x2a0] ss:$16 sps:$4 sm:$0xff]   ;;  %v2904_v40 = vld [vmem:[%s3568_s25 + $0x2a8] ss:$16 sps:$4 sm:$0xff]   ;;  %p3215_p1 = scmp.ne.s32.totalorder %s3839_s13, %s3214_s1  ;;  %s3218_s17 = sshll.u32 %s3317_s18, 4  ;;  %s3219_s17 = int_to_ptr.vmem [resolvable:$false] %s3218_s17 }
  0xc0   : > { %s3220_s11 = scalar_lea.vmem %s3219_s17, 64  ;;  %p3221_p0 = scmp.lt.s32.totalorder %s3839_s13, %s3219_s17 }
  0xc1   : > { %p3216_p13 = pnand %p3215_p1, %p3924_p4  ;;  %p3222_p5 = scmp.lt.s32.totalorder %s3220_s11, %s3214_s1 }
  0xc2   : > { %1567 = vmatpush1.bf16.msra.mxu0 %v2833_v41  ;;  %1690 = vmatpush1.bf16.msra.mxu1 %v2834_v44  ;;  %v2909_v41 = vld [vmem:[%s3568_s25 + $0x2c4] ss:$16 sps:$4 sm:$0xff]   ;;  %v2907_v44 = vld [vmem:[%s3568_s25 + $0x2c0] ss:$16 sps:$4 sm:$0xff]  }
  0xc3   : > { %1568 = vmatprep.subr.bf16.mxu0 %v2835_v45  ;;  %1691 = vmatprep.subr.bf16.mxu1 %v2837_v46  ;;  %v2910_v45 = vld [vmem:[%s3568_s25 + $0x2c8] ss:$16 sps:$4 sm:$0xff]   ;;  %v2915_v46 = vld [vmem:[%s3568_s25 + $0x2e4] ss:$16 sps:$4 sm:$0xff]   ;;  %p3217_p11 = pneg %p3216_p13  ;;  %p3223_p9 = por %p3222_p5, %p3221_p0 }
  0xc5   : > { %p3224_p3 = pnand %p3223_p9, %p3217_p11 }
  0xc6   : > { %1569 = vmatpush1.bf16.msra.mxu0 %v2839_v47  ;;  %1692 = vmatpush1.bf16.msra.mxu1 %v2840_v48  ;;  %v2918_v47 = vld [vmem:[%s3568_s25 + $0x2ec] ss:$16 sps:$4 sm:$0xff]   ;;  %v2913_v48 = vld [vmem:[%s3568_s25 + $0x2e0] ss:$16 sps:$4 sm:$0xff]  }
  0xc7   : > { %1570 = vmatprep.subr.bf16.mxu0 %v2841_v50  ;;  %1693 = vmatprep.subr.bf16.mxu1 %v2843_v51  ;;  %v2921_v50 = vld [vmem:[%s3568_s25 + $0x304] ss:$16 sps:$4 sm:$0xff]   ;;  %v2924_v51 = vld [vmem:[%s3568_s25 + $0x30c] ss:$16 sps:$4 sm:$0xff]  }
  0xca   : > { %1571 = vmatpush1.bf16.msra.mxu0 %v2845_v53  ;;  %1694 = vmatpush1.bf16.msra.mxu1 %v2846_v55  ;;  %v2922_v53 = vld [vmem:[%s3568_s25 + $0x308] ss:$16 sps:$4 sm:$0xff]   ;;  %v2930_v55 = vld [vmem:[%s3568_s25 + $0x32c] ss:$16 sps:$4 sm:$0xff]  }
  0xcb   : > { %1572 = vmatprep.subr.bf16.mxu0 %v2847_v56  ;;  %1695 = vmatprep.subr.bf16.mxu1 %v2849_v57  ;;  %v2925_v56 = vld [vmem:[%s3568_s25 + $0x320] ss:$16 sps:$4 sm:$0xff]   ;;  %v2928_v57 = vld [vmem:[%s3568_s25 + $0x328] ss:$16 sps:$4 sm:$0xff]  }
  0xce   : > { %1573 = vmatpush1.bf16.msra.mxu0 %v2851_v59  ;;  %1696 = vmatpush1.bf16.msra.mxu1 %v2852_v61  ;;  %v2936_v59 = vld [vmem:[%s3568_s25 + $0x34c] ss:$16 sps:$4 sm:$0xff]   ;;  %v2934_v61 = vld [vmem:[%s3568_s25 + $0x348] ss:$16 sps:$4 sm:$0xff]  }
  0xcf   : > { %1574 = vmatprep.subr.bf16.mxu0 %v2853_v62  ;;  %1697 = vmatprep.subr.bf16.mxu1 %v2855_v63  ;;  %v2939_v62 = vld [vmem:[%s3568_s25 + $0x364] ss:$16 sps:$4 sm:$0xff]   ;;  %v2942_v63 = vld [vmem:[%s3568_s25 + $0x36c] ss:$16 sps:$4 sm:$0xff]  }
  0xd2   : > { %1575 = vmatpush1.bf16.msra.mxu0 %v2857_v0  ;;  %1698 = vmatpush1.bf16.msra.mxu1 %v2858_v1  ;;  %v2937_v0 = vld [vmem:[%s3568_s25 + $0x360] ss:$16 sps:$4 sm:$0xff]   ;;  %v2940_v1 = vld [vmem:[%s3568_s25 + $0x368] ss:$16 sps:$4 sm:$0xff]  }
  0xd3   : > { %1576 = vmatprep.subr.bf16.mxu0 %v2859_v2  ;;  %1699 = vmatprep.subr.bf16.mxu1 %v2861_v3  ;;  %v2945_v2 = vld [vmem:[%s3568_s25 + $0x384] ss:$16 sps:$4 sm:$0xff]   ;;  %v2948_v3 = vld [vmem:[%s3568_s25 + $0x38c] ss:$16 sps:$4 sm:$0xff]  }
  0xd6   : > { %1577 = vmatpush1.bf16.msra.mxu0 %v2863_v4  ;;  %1700 = vmatpush1.bf16.msra.mxu1 %v2864_v5  ;;  %v2943_v4 = vld [vmem:[%s3568_s25 + $0x380] ss:$16 sps:$4 sm:$0xff]   ;;  %v2946_v5 = vld [vmem:[%s3568_s25 + $0x388] ss:$16 sps:$4 sm:$0xff]  }
  0xd7   : > { %1578 = vmatprep.subr.bf16.mxu0 %v2865_v6  ;;  %1701 = vmatprep.subr.bf16.mxu1 %v2867_v7  ;;  %v2951_v6 = vld [vmem:[%s3568_s25 + $0x3a4] ss:$16 sps:$4 sm:$0xff]   ;;  %v2954_v7 = vld [vmem:[%s3568_s25 + $0x3ac] ss:$16 sps:$4 sm:$0xff]  }
  0xda   : > { %1579 = vmatpush1.bf16.msra.mxu0 %v2869_v9  ;;  %1702 = vmatpush1.bf16.msra.mxu1 %v2870_v10  ;;  %v2952_v9 = vld [vmem:[%s3568_s25 + $0x3a8] ss:$16 sps:$4 sm:$0xff]   ;;  %v2957_v10 = vld [vmem:[%s3568_s25 + $0x3c4] ss:$16 sps:$4 sm:$0xff]  }
  0xdb   : > { %1589 = vmatprep.subr.bf16.mxu0 %v2873_v12  ;;  %1712 = vmatprep.subr.bf16.mxu1 %v2876_v13  ;;  %v2955_v12 = vld [vmem:[%s3568_s25 + $0x3c0] ss:$16 sps:$4 sm:$0xff]   ;;  %v2958_v13 = vld [vmem:[%s3568_s25 + $0x3c8] ss:$16 sps:$4 sm:$0xff]  }
  0xdd   : > { %1581 = vmatmul.mubr.bf16.vlgmr.msra.gmra.mrb[0].mxu0 %v3655_v16  ;;  %1704 = vmatmul.mubr.bf16.vlgmr.msra.gmra.mrb[0].mxu1 %v3655_v16 }
  0xde   : > { %1590 = vmatpush1.bf16.msra.mxu0 %v2871_v15  ;;  %1713 = vmatpush1.bf16.msra.mxu1 %v2874_v17  ;;  %v2966_v15 = vld [vmem:[%s3568_s25 + $0x3ec] ss:$16 sps:$4 sm:$0xff]   ;;  %v2961_v17 = vld [vmem:[%s3568_s25 + $0x3e0] ss:$16 sps:$4 sm:$0xff]  }
  0xdf   : > { %1591 = vmatprep.subr.bf16.mxu0 %v2879_v20  ;;  %1714 = vmatprep.subr.bf16.mxu1 %v2882_v21  ;;  %v2964_v20 = vld [vmem:[%s3568_s25 + $0x3e8] ss:$16 sps:$4 sm:$0xff]   ;;  %v2969_v21 = vld [vmem:[%s3568_s25 + $0x404] ss:$16 sps:$4 sm:$0xff]  }
  0xe0   : > { %1621 = vmatprep.mubr.bf16.mxu0 %v581_v22  ;;  %1744 = vmatprep.mubr.bf16.mxu1 %v581_v22  ;;  %v2972_v22 = vld [vmem:[%s3568_s25 + $0x40c] ss:$16 sps:$4 sm:$0xff]  }
  0xe2   : > { %1592 = vmatpush1.bf16.msra.mxu0 %v2877_v23  ;;  %1715 = vmatpush1.bf16.msra.mxu1 %v2880_v24  ;;  %v2967_v23 = vld [vmem:[%s3568_s25 + $0x400] ss:$16 sps:$4 sm:$0xff]   ;;  %v2970_v24 = vld [vmem:[%s3568_s25 + $0x408] ss:$16 sps:$4 sm:$0xff]  }
  0xe3   : > { %1593 = vmatprep.subr.bf16.mxu0 %v2885_v25  ;;  %1716 = vmatprep.subr.bf16.mxu1 %v2888_v26  ;;  %v580_v25 = vcombine.high %v3655_v16, %v3655_v16  ;;  %v2975_v26 = vld [vmem:[%s3568_s25 + $0x424] ss:$16 sps:$4 sm:$0xff]  }
  0xe4   : > { %v2981_v16 = vld [vmem:[%s3568_s25 + $0x444] ss:$16 sps:$4 sm:$0xff]  }
  0xe6   : > { %1594 = vmatpush1.bf16.msra.mxu0 %v2883_v27  ;;  %1717 = vmatpush1.bf16.msra.mxu1 %v2886_v28  ;;  %v2978_v27 = vld [vmem:[%s3568_s25 + $0x42c] ss:$16 sps:$4 sm:$0xff]   ;;  %v2973_v28 = vld [vmem:[%s3568_s25 + $0x420] ss:$16 sps:$4 sm:$0xff]  }
  0xe7   : > { %1595 = vmatprep.subr.bf16.mxu0 %v2891_v29  ;;  %1718 = vmatprep.subr.bf16.mxu1 %v2894_v30  ;;  %v2976_v29 = vld [vmem:[%s3568_s25 + $0x428] ss:$16 sps:$4 sm:$0xff]   ;;  %v2984_v30 = vld [vmem:[%s3568_s25 + $0x44c] ss:$16 sps:$4 sm:$0xff]  }
  0xea   : > { %1596 = vmatpush1.bf16.msra.mxu0 %v2889_v31  ;;  %1719 = vmatpush1.bf16.msra.mxu1 %v2892_v32  ;;  %v2979_v31 = vld [vmem:[%s3568_s25 + $0x440] ss:$16 sps:$4 sm:$0xff]   ;;  %v2982_v32 = vld [vmem:[%s3568_s25 + $0x448] ss:$16 sps:$4 sm:$0xff]  }
  0xeb   : > { %1597 = vmatprep.subr.bf16.mxu0 %v2897_v33  ;;  %1720 = vmatprep.subr.bf16.mxu1 %v2900_v34  ;;  %v2987_v33 = vld [vmem:[%s3568_s25 + $0x464] ss:$16 sps:$4 sm:$0xff]   ;;  %v2990_v34 = vld [vmem:[%s3568_s25 + $0x46c] ss:$16 sps:$4 sm:$0xff]  }
  0xee   : > { %1598 = vmatpush1.bf16.msra.mxu0 %v2895_v35  ;;  %1721 = vmatpush1.bf16.msra.mxu1 %v2898_v36  ;;  %v2985_v35 = vld [vmem:[%s3568_s25 + $0x460] ss:$16 sps:$4 sm:$0xff]   ;;  %v2988_v36 = vld [vmem:[%s3568_s25 + $0x468] ss:$16 sps:$4 sm:$0xff]  }
  0xef   : > { %1599 = vmatprep.subr.bf16.mxu0 %v2903_v37  ;;  %1722 = vmatprep.subr.bf16.mxu1 %v2906_v38  ;;  %v2996_v37 = vld [vmem:[%s3568_s25 + $0x48c] ss:$16 sps:$4 sm:$0xff]   ;;  %v2991_v38 = vld [vmem:[%s3568_s25 + $0x480] ss:$16 sps:$4 sm:$0xff]  }
  0xf2   : > { %1600 = vmatpush1.bf16.msra.mxu0 %v2901_v39  ;;  %1723 = vmatpush1.bf16.msra.mxu1 %v2904_v40  ;;  %v2994_v39 = vld [vmem:[%s3568_s25 + $0x488] ss:$16 sps:$4 sm:$0xff]   ;;  %v2999_v40 = vld [vmem:[%s3568_s25 + $0x4a4] ss:$16 sps:$4 sm:$0xff]  }
  0xf3   : > { %1601 = vmatprep.subr.bf16.mxu0 %v2909_v41  ;;  %1724 = vmatprep.subr.bf16.mxu1 %v2912_v42  ;;  %v3002_v41 = vld [vmem:[%s3568_s25 + $0x4ac] ss:$16 sps:$4 sm:$0xff]   ;;  %v2997_v42 = vld [vmem:[%s3568_s25 + $0x4a0] ss:$16 sps:$4 sm:$0xff]  }
  0xf6   : > { %1602 = vmatpush1.bf16.msra.mxu0 %v2907_v44  ;;  %1725 = vmatpush1.bf16.msra.mxu1 %v2910_v45  ;;  %v3000_v44 = vld [vmem:[%s3568_s25 + $0x4a8] ss:$16 sps:$4 sm:$0xff]   ;;  %v3005_v45 = vld [vmem:[%s3568_s25 + $0x4c4] ss:$16 sps:$4 sm:$0xff]  }
  0xf7   : > { %1603 = vmatprep.subr.bf16.mxu0 %v2915_v46  ;;  %1726 = vmatprep.subr.bf16.mxu1 %v2918_v47  ;;  %v3008_v46 = vld [vmem:[%s3568_s25 + $0x4cc] ss:$16 sps:$4 sm:$0xff]   ;;  %v3003_v47 = vld [vmem:[%s3568_s25 + $0x4c0] ss:$16 sps:$4 sm:$0xff]  }
  0xfa   : > { %1604 = vmatpush1.bf16.msra.mxu0 %v2913_v48  ;;  %1727 = vmatpush1.bf16.msra.mxu1 %v2916_v49  ;;  %v3006_v48 = vld [vmem:[%s3568_s25 + $0x4c8] ss:$16 sps:$4 sm:$0xff]   ;;  %v3011_v49 = vld [vmem:[%s3568_s25 + $0x4e4] ss:$16 sps:$4 sm:$0xff]  }
  0xfb   : > { %1605 = vmatprep.subr.bf16.mxu0 %v2921_v50  ;;  %1728 = vmatprep.subr.bf16.mxu1 %v2924_v51  ;;  %v3014_v50 = vld [vmem:[%s3568_s25 + $0x4ec] ss:$16 sps:$4 sm:$0xff]   ;;  %v3009_v51 = vld [vmem:[%s3568_s25 + $0x4e0] ss:$16 sps:$4 sm:$0xff]  }
  0xfe   : > { %1606 = vmatpush1.bf16.msra.mxu0 %v2919_v52  ;;  %1729 = vmatpush1.bf16.msra.mxu1 %v2922_v53  ;;  %v3012_v52 = vld [vmem:[%s3568_s25 + $0x4e8] ss:$16 sps:$4 sm:$0xff]   ;;  %v3017_v53 = vld [vmem:[%s3568_s25 + $0x504] ss:$16 sps:$4 sm:$0xff]  }
  0xff   : > { %1607 = vmatprep.subr.bf16.mxu0 %v2927_v54  ;;  %1730 = vmatprep.subr.bf16.mxu1 %v2930_v55  ;;  %v3020_v54 = vld [vmem:[%s3568_s25 + $0x50c] ss:$16 sps:$4 sm:$0xff]   ;;  %v3015_v55 = vld [vmem:[%s3568_s25 + $0x500] ss:$16 sps:$4 sm:$0xff]  }
 0x102   : > { %1608 = vmatpush1.bf16.msra.mxu0 %v2925_v56  ;;  %1731 = vmatpush1.bf16.msra.mxu1 %v2928_v57  ;;  %v3018_v56 = vld [vmem:[%s3568_s25 + $0x508] ss:$16 sps:$4 sm:$0xff]   ;;  %v3023_v57 = vld [vmem:[%s3568_s25 + $0x524] ss:$16 sps:$4 sm:$0xff]  }
 0x103   : > { %1609 = vmatprep.subr.bf16.mxu0 %v2933_v58  ;;  %1732 = vmatprep.subr.bf16.mxu1 %v2936_v59  ;;  %v3026_v58 = vld [vmem:[%s3568_s25 + $0x52c] ss:$16 sps:$4 sm:$0xff]   ;;  %v3021_v59 = vld [vmem:[%s3568_s25 + $0x520] ss:$16 sps:$4 sm:$0xff]  }
 0x106   : > { %1610 = vmatpush1.bf16.msra.mxu0 %v2931_v60  ;;  %1733 = vmatpush1.bf16.msra.mxu1 %v2934_v61  ;;  %v3024_v60 = vld [vmem:[%s3568_s25 + $0x528] ss:$16 sps:$4 sm:$0xff]   ;;  %v3029_v61 = vld [vmem:[%s3568_s25 + $0x544] ss:$16 sps:$4 sm:$0xff]  }
 0x107   : > { %1611 = vmatprep.subr.bf16.mxu0 %v2939_v62  ;;  %1734 = vmatprep.subr.bf16.mxu1 %v2942_v63  ;;  %v3032_v62 = vld [vmem:[%s3568_s25 + $0x54c] ss:$16 sps:$4 sm:$0xff]   ;;  %v3027_v63 = vld [vmem:[%s3568_s25 + $0x540] ss:$16 sps:$4 sm:$0xff]  }
 0x10a   : > { %1612 = vmatpush1.bf16.msra.mxu0 %v2937_v0  ;;  %1735 = vmatpush1.bf16.msra.mxu1 %v2940_v1  ;;  %v3030_v0 = vld [vmem:[%s3568_s25 + $0x548] ss:$16 sps:$4 sm:$0xff]   ;;  %v3035_v1 = vld [vmem:[%s3568_s25 + $0x564] ss:$16 sps:$4 sm:$0xff]  }
 0x10b   : > { %1613 = vmatprep.subr.bf16.mxu0 %v2945_v2  ;;  %1736 = vmatprep.subr.bf16.mxu1 %v2948_v3  ;;  %v3038_v2 = vld [vmem:[%s3568_s25 + $0x56c] ss:$16 sps:$4 sm:$0xff]   ;;  %v3033_v3 = vld [vmem:[%s3568_s25 + $0x560] ss:$16 sps:$4 sm:$0xff]  }
 0x10e   : > { %1614 = vmatpush1.bf16.msra.mxu0 %v2943_v4  ;;  %1737 = vmatpush1.bf16.msra.mxu1 %v2946_v5  ;;  %v3036_v4 = vld [vmem:[%s3568_s25 + $0x568] ss:$16 sps:$4 sm:$0xff]   ;;  %v3041_v5 = vld [vmem:[%s3568_s25 + $0x584] ss:$16 sps:$4 sm:$0xff]  }
 0x10f   : > { %1615 = vmatprep.subr.bf16.mxu0 %v2951_v6  ;;  %1738 = vmatprep.subr.bf16.mxu1 %v2954_v7  ;;  %v3044_v6 = vld [vmem:[%s3568_s25 + $0x58c] ss:$16 sps:$4 sm:$0xff]   ;;  %v3039_v7 = vld [vmem:[%s3568_s25 + $0x580] ss:$16 sps:$4 sm:$0xff]  }
 0x112   : > { %1616 = vmatpush1.bf16.msra.mxu0 %v2949_v8  ;;  %1739 = vmatpush1.bf16.msra.mxu1 %v2952_v9  ;;  %v3042_v8 = vld [vmem:[%s3568_s25 + $0x588] ss:$16 sps:$4 sm:$0xff]   ;;  %v3047_v9 = vld [vmem:[%s3568_s25 + $0x5a4] ss:$16 sps:$4 sm:$0xff]  }
 0x113   : > { %1617 = vmatprep.subr.bf16.mxu0 %v2957_v10  ;;  %1740 = vmatprep.subr.bf16.mxu1 %v2960_v11  ;;  %v3050_v10 = vld [vmem:[%s3568_s25 + $0x5ac] ss:$16 sps:$4 sm:$0xff]   ;;  %v3045_v11 = vld [vmem:[%s3568_s25 + $0x5a0] ss:$16 sps:$4 sm:$0xff]  }
 0x116   : > { %1618 = vmatpush1.bf16.msra.mxu0 %v2955_v12  ;;  %1741 = vmatpush1.bf16.msra.mxu1 %v2958_v13  ;;  %v3048_v12 = vld [vmem:[%s3568_s25 + $0x5a8] ss:$16 sps:$4 sm:$0xff]   ;;  %v3053_v13 = vld [vmem:[%s3568_s25 + $0x5c4] ss:$16 sps:$4 sm:$0xff]  }
 0x117   : > { %1619 = vmatprep.subr.bf16.mxu0 %v2963_v14  ;;  %1742 = vmatprep.subr.bf16.mxu1 %v2966_v15  ;;  %v3056_v14 = vld [vmem:[%s3568_s25 + $0x5cc] ss:$16 sps:$4 sm:$0xff]   ;;  %v3051_v15 = vld [vmem:[%s3568_s25 + $0x5c0] ss:$16 sps:$4 sm:$0xff]  }
 0x11a   : > { %1620 = vmatpush1.bf16.msra.mxu0 %v2961_v17  ;;  %1743 = vmatpush1.bf16.msra.mxu1 %v2964_v20  ;;  %v3054_v17 = vld [vmem:[%s3568_s25 + $0x5c8] ss:$16 sps:$4 sm:$0xff]   ;;  %v3059_v20 = vld [vmem:[%s3568_s25 + $0x5e4] ss:$16 sps:$4 sm:$0xff]  }
 0x11b   : > { %1630 = vmatprep.subr.bf16.mxu0 %v2969_v21  ;;  %1753 = vmatprep.subr.bf16.mxu1 %v2972_v22  ;;  %v3062_v21 = vld [vmem:[%s3568_s25 + $0x5ec] ss:$16 sps:$4 sm:$0xff]   ;;  %v3057_v22 = vld [vmem:[%s3568_s25 + $0x5e0] ss:$16 sps:$4 sm:$0xff]  }
 0x11d   : > { %1622 = vmatmul.mubr.bf16.vlgmr.msra.gmra.mrb[0].mxu0 %v580_v25  ;;  %1745 = vmatmul.mubr.bf16.vlgmr.msra.gmra.mrb[0].mxu1 %v580_v25  ;;  %v3066_v25 = vld [vmem:[%s3579_s30 + $0xc0] sm:$0xff]  }
 0x11e   : > { %1631 = vmatpush1.bf16.msra.mxu0 %v2967_v23  ;;  %1754 = vmatpush1.bf16.msra.mxu1 %v2970_v24  ;;  %v3060_v23 = vld [vmem:[%s3568_s25 + $0x5e8] ss:$16 sps:$4 sm:$0xff]  }
 0x11f   : > { %1632 = vmatprep.subr.bf16.mxu0 %v2975_v26  ;;  %1755 = vmatprep.subr.bf16.mxu1 %v2978_v27  ;;  %v3064_v24 = vld [vmem:[%s3579_s30 + $0x40] sm:$0xff]  }
 0x120   : > { %1662 = vmatprep.mubr.bf16.mxu0 %v3658_v18  ;;  %1785 = vmatprep.mubr.bf16.mxu1 %v3658_v18  ;;  %v2993_v18 = vld [vmem:[%s3568_s25 + $0x484] ss:$16 sps:$4 sm:$0xff]   ;;  %v3065_v26 = vld [vmem:[%s3579_s30] sm:$0xff]  }
 0x121   : > { %v3067_v27 = vld [vmem:[%s3579_s30 + $0x80] sm:$0xff]  }
 0x122   : > { %1633 = vmatpush1.bf16.msra.mxu0 %v2973_v28  ;;  %1756 = vmatpush1.bf16.msra.mxu1 %v2976_v29  ;;  %v3068_v28 = vld [vmem:[%s3579_s30 + $0x48] sm:$0xff]  }
 0x123   : > { %1634 = vmatprep.subr.bf16.mxu0 %v2981_v16  ;;  %1757 = vmatprep.subr.bf16.mxu1 %v2984_v30  ;;  %v3070_v29 = vld [vmem:[%s3579_s30 + $0xc8] sm:$0xff]  }
 0x124   : > { %v3069_v16 = vld [vmem:[%s3579_s30 + $0x8] sm:$0xff]  }
 0x125   : > { %v3071_v30 = vld [vmem:[%s3579_s30 + $0x88] sm:$0xff]  }
 0x126   : > { %1635 = vmatpush1.bf16.msra.mxu0 %v2979_v31  ;;  %1758 = vmatpush1.bf16.msra.mxu1 %v2982_v32  ;;  %v3072_v31 = vld [vmem:[%s3579_s30 + $0x50] sm:$0xff]  }
 0x127   : > { %1636 = vmatprep.subr.bf16.mxu0 %v2987_v33  ;;  %1759 = vmatprep.subr.bf16.mxu1 %v2990_v34  ;;  %v3074_v32 = vld [vmem:[%s3579_s30 + $0xd0] sm:$0xff]  }
 0x128   : > { %v3073_v33 = vld [vmem:[%s3579_s30 + $0x10] sm:$0xff]  }
 0x129   : > { %v3075_v34 = vld [vmem:[%s3579_s30 + $0x90] sm:$0xff]  }
 0x12a   : > { %1637 = vmatpush1.bf16.msra.mxu0 %v2985_v35  ;;  %1760 = vmatpush1.bf16.msra.mxu1 %v2988_v36  ;;  %v3078_v35 = vld [vmem:[%s3579_s30 + $0xd8] sm:$0xff]  }
 0x12b   : > { %1638 = vmatprep.subr.bf16.mxu0 %v2993_v18  ;;  %1761 = vmatprep.subr.bf16.mxu1 %v2996_v37  ;;  %v3077_v36 = vld [vmem:[%s3579_s30 + $0x18] sm:$0xff]   ;;  %v3080_v37 = vld [vmem:[%s3579_s30 + $0x60] sm:$0xff]  }
 0x12c   : > { %v3079_v18 = vld [vmem:[%s3579_s30 + $0x98] sm:$0xff]  }
 0x12e   : > { %1639 = vmatpush1.bf16.msra.mxu0 %v2991_v38  ;;  %1762 = vmatpush1.bf16.msra.mxu1 %v2994_v39  ;;  %v3081_v38 = vld [vmem:[%s3579_s30 + $0x20] sm:$0xff]  }
 0x12f   : > { %1640 = vmatprep.subr.bf16.mxu0 %v2999_v40  ;;  %1763 = vmatprep.subr.bf16.mxu1 %v3002_v41  ;;  %v3082_v39 = vld [vmem:[%s3579_s30 + $0xe0] sm:$0xff]   ;;  %v3084_v41 = vld [vmem:[%s3579_s30 + $0x68] sm:$0xff]  }
 0x130   : > { %v3083_v40 = vld [vmem:[%s3579_s30 + $0xa0] sm:$0xff]  }
 0x132   : > { %1641 = vmatpush1.bf16.msra.mxu0 %v2997_v42  ;;  %1764 = vmatpush1.bf16.msra.mxu1 %v3000_v44  ;;  %v3085_v42 = vld [vmem:[%s3579_s30 + $0x28] sm:$0xff]  }
 0x133   : > { %1642 = vmatprep.subr.bf16.mxu0 %v3005_v45  ;;  %1765 = vmatprep.subr.bf16.mxu1 %v3008_v46  ;;  %v3086_v44 = vld [vmem:[%s3579_s30 + $0xe8] sm:$0xff]   ;;  %v3088_v46 = vld [vmem:[%s3579_s30 + $0x70] sm:$0xff]  }
 0x134   : > { %v3087_v45 = vld [vmem:[%s3579_s30 + $0xa8] sm:$0xff]  }
 0x136   : > { %1643 = vmatpush1.bf16.msra.mxu0 %v3003_v47  ;;  %1766 = vmatpush1.bf16.msra.mxu1 %v3006_v48  ;;  %v3089_v47 = vld [vmem:[%s3579_s30 + $0x30] sm:$0xff]  }
 0x137   : > { %1644 = vmatprep.subr.bf16.mxu0 %v3011_v49  ;;  %1767 = vmatprep.subr.bf16.mxu1 %v3014_v50  ;;  %v3090_v48 = vld [vmem:[%s3579_s30 + $0xf0] sm:$0xff]   ;;  %v3092_v50 = vld [vmem:[%s3579_s30 + $0x78] sm:$0xff]  }
 0x138   : > { %v3091_v49 = vld [vmem:[%s3579_s30 + $0xb0] sm:$0xff]  }
 0x13a   : > { %1645 = vmatpush1.bf16.msra.mxu0 %v3009_v51  ;;  %1768 = vmatpush1.bf16.msra.mxu1 %v3012_v52  ;;  %v3094_v51 = vld [vmem:[%s3579_s30 + $0xf8] sm:$0xff]  }
 0x13b   : > { %1646 = vmatprep.subr.bf16.mxu0 %v3017_v53  ;;  %1769 = vmatprep.subr.bf16.mxu1 %v3020_v54  ;;  %v3093_v52 = vld [vmem:[%s3579_s30 + $0x38] sm:$0xff]   ;;  %v3316_v54 = vmov 1983009808  }
 0x13c   : > { %v3095_v53 = vld [vmem:[%s3579_s30 + $0xb8] sm:$0xff]  }
 0x13e   : > { %1647 = vmatpush1.bf16.msra.mxu0 %v3015_v55  ;;  %1770 = vmatpush1.bf16.msra.mxu1 %v3018_v56  ;;  %v1801_v55 = vunpack.c.l.s4 %v3316_v54  ;;  %v1826_v56 = vsub.s32 0, %v3624_v43 }
 0x13f   : > { %1648 = vmatprep.subr.bf16.mxu0 %v3023_v57  ;;  %1771 = vmatprep.subr.bf16.mxu1 %v3026_v58  ;;  %v1830_v57 = vsub.s32 1, %v3624_v43  ;;  %v1834_v58 = vsub.s32 2, %v3624_v43 }
 0x142   : > { %1649 = vmatpush1.bf16.msra.mxu0 %v3021_v59  ;;  %1772 = vmatpush1.bf16.msra.mxu1 %v3024_v60  ;;  %v1838_v59 = vsub.s32 3, %v3624_v43  ;;  %v1822_v60 = vld [vmem:[%s3576_s28] sm:$0xf] }
 0x143   : > { %1650 = vmatprep.subr.bf16.mxu0 %v3029_v61  ;;  %1773 = vmatprep.subr.bf16.mxu1 %v3032_v62  ;;  %v1802_v61 = vunpack.c.0.s8 %v1801_v55  ;;  %v1827_v62 = vrot.slane %v1822_v60, %v1826_v56 }
 0x146   : > { %1651 = vmatpush1.bf16.msra.mxu0 %v3027_v63  ;;  %1774 = vmatpush1.bf16.msra.mxu1 %v3030_v0  ;;  %v1831_v63 = vrot.slane %v1822_v60, %v1830_v57  ;;  %v1835_v0 = vrot.slane %v1822_v60, %v1834_v58 }
 0x147   : > { %1652 = vmatprep.subr.bf16.mxu0 %v3035_v1  ;;  %1775 = vmatprep.subr.bf16.mxu1 %v3038_v2  ;;  %v1839_v1 = vrot.slane %v1822_v60, %v1838_v59  ;;  %v1805_v2 = vsub.s32 %v1802_v61, %v3624_v43 }
 0x14a   : > { %1653 = vmatpush1.bf16.msra.mxu0 %v3033_v3  ;;  %1776 = vmatpush1.bf16.msra.mxu1 %v3036_v4  ;;  %v1840_v3 = vcombine.low %v1827_v62, %v1831_v63  ;;  %v1841_v4 = vcombine.low %v1835_v0, %v1839_v1 }
 0x14b   : > { %1654 = vmatprep.subr.bf16.mxu0 %v3041_v5  ;;  %1777 = vmatprep.subr.bf16.mxu1 %v3044_v6 }
 0x14e   : > { %1655 = vmatpush1.bf16.msra.mxu0 %v3039_v7  ;;  %1778 = vmatpush1.bf16.msra.mxu1 %v3042_v8  ;;  %v1848_v7 = vrot.slane %v1840_v3, %v1805_v2  ;;  %v1855_v8 = vrot.slane %v1841_v4, %v1805_v2 }
 0x14f   : > { %1656 = vmatprep.subr.bf16.mxu0 %v3047_v9  ;;  %1779 = vmatprep.subr.bf16.mxu1 %v3050_v10 }
 0x152   : > { %1657 = vmatpush1.bf16.msra.mxu0 %v3045_v11  ;;  %1780 = vmatpush1.bf16.msra.mxu1 %v3048_v12 }
 0x153   : > { %1658 = vmatprep.subr.bf16.mxu0 %v3053_v13  ;;  %1781 = vmatprep.subr.bf16.mxu1 %v3056_v14 }
 0x156   : > { %1659 = vmatpush1.bf16.msra.mxu0 %v3051_v15  ;;  %1782 = vmatpush1.bf16.msra.mxu1 %v3054_v17 }
 0x157   : > { %1660 = vmatprep.subr.bf16.mxu0 %v3059_v20  ;;  %1783 = vmatprep.subr.bf16.mxu1 %v3062_v21 }
 0x15a   : > { %1661 = vmatpush1.bf16.msra.mxu0 %v3057_v22  ;;  %1784 = vmatpush1.bf16.msra.mxu1 %v3060_v23  ;;  %v1856_v22 = vcombine.low %v1848_v7, %v1855_v8 }
 0x15b   : > { %2623 = vmatprep.subr.bf16.mxu0 %v3064_v24  ;;  %2645 = vmatprep.subr.bf16.mxu1 %v3066_v25 }
 0x15d   : > { %1663 = vmatmul.mubr.bf16.vlgmr.msra.gmra.mrb[0].mxu0 %v3660_v19  ;;  %1786 = vmatmul.mubr.bf16.vlgmr.msra.gmra.mrb[0].mxu1 %v3660_v19  ;;  %v3076_v19 = vld [vmem:[%s3579_s30 + $0x58] sm:$0xff]  }
 0x15e   : > { %2624 = vmatpush3.bf16.msra.mxu0 %v3065_v26  ;;  %2646 = vmatpush3.bf16.msra.mxu1 %v3067_v27 }
 0x15f   : > { %2625 = vmatprep.subr.bf16.mxu0 %v3068_v28  ;;  %2647 = vmatprep.subr.bf16.mxu1 %v3070_v29 }
 0x162   : > { %2626 = vmatpush3.bf16.msra.mxu0 %v3069_v16  ;;  %2648 = vmatpush3.bf16.msra.mxu1 %v3071_v30 }
 0x163   : > { %2627 = vmatprep.subr.bf16.mxu0 %v3072_v31  ;;  %2649 = vmatprep.subr.bf16.mxu1 %v3074_v32 }
 0x166   : > { %2628 = vmatpush3.bf16.msra.mxu0 %v3073_v33  ;;  %2650 = vmatpush3.bf16.msra.mxu1 %v3075_v34 }
 0x167   : > { %2629 = vmatprep.subr.bf16.mxu0 %v3076_v19  ;;  %2651 = vmatprep.subr.bf16.mxu1 %v3078_v35 }
 0x16a   : > { %2630 = vmatpush3.bf16.msra.mxu0 %v3077_v36  ;;  %2652 = vmatpush3.bf16.msra.mxu1 %v3079_v18 }
 0x16b   : > { %2631 = vmatprep.subr.bf16.mxu0 %v3080_v37  ;;  %2653 = vmatprep.subr.bf16.mxu1 %v3082_v39 }
 0x16e   : > { %2632 = vmatpush3.bf16.msra.mxu0 %v3081_v38  ;;  %2654 = vmatpush3.bf16.msra.mxu1 %v3083_v40 }
 0x16f   : > { %2633 = vmatprep.subr.bf16.mxu0 %v3084_v41  ;;  %2655 = vmatprep.subr.bf16.mxu1 %v3086_v44 }
 0x172   : > { %2634 = vmatpush3.bf16.msra.mxu0 %v3085_v42  ;;  %2656 = vmatpush3.bf16.msra.mxu1 %v3087_v45 }
 0x173   : > { %2635 = vmatprep.subr.bf16.mxu0 %v3088_v46  ;;  %2657 = vmatprep.subr.bf16.mxu1 %v3090_v48 }
 0x176   : > { %2636 = vmatpush3.bf16.msra.mxu0 %v3089_v47  ;;  %2658 = vmatpush3.bf16.msra.mxu1 %v3091_v49 }
 0x177   : > { %2637 = vmatprep.subr.bf16.mxu0 %v3092_v50  ;;  %2659 = vmatprep.subr.bf16.mxu1 %v3094_v51 }
 0x17a   : > { %2638 = vmatpush3.bf16.msra.mxu0 %v3093_v52  ;;  %2660 = vmatpush3.bf16.msra.mxu1 %v3095_v53 }
 0x230   : > { %v1664_v5 = vpop.f32.mrb[0].mxu0  ;;  %v1787_v6 = vpop.f32.mrb[0].mxu1 }
 0x231   : > { %v1666_v9 = vpop.f32.mrb[1].mxu0  ;;  %v1789_v10 = vpop.f32.mrb[1].mxu1 }
 0x232   : > { %v1798_v11 = vcombine.low %v1664_v5, %v1666_v9  ;;  %v1799_v12 = vcombine.low %v1787_v6, %v1789_v10  ;;  %v1668_v13 = vpop.f32.mrb[2].mxu0  ;;  %v1791_v14 = vpop.f32.mrb[2].mxu1 }
 0x233   : > { %v1669_v15 = vpop.f32.mrb[3].mxu0  ;;  %v1792_v17 = vpop.f32.mrb[3].mxu1 }
 0x234   : > { %v1806_v20 = vrot.slane %v1798_v11, %v1805_v2  ;;  %v1813_v21 = vrot.slane %v1799_v12, %v1805_v2 }
 0x236   : > { %v1814_v23 = vcombine.low %v1806_v20, %v1813_v21 }
 0x238   : > { %v1858_v43 = vadd.f32 %v1856_v22, %v1814_v23 }
 0x23a   : > { %v1867_v24 = vrot.slane %v1858_v43, %v1805_v2  ;;  %v1860_v25 = vcombine.high %v1858_v43, %v1858_v43 }
 0x23c   : > { %v1875_v26 = vcombine.high %v1867_v24, %v1867_v24  ;;  %v1874_v27 = vrot.slane %v1860_v25, %v1805_v2  ;;  %v1881_v16 = vpack.c.bf16 %v1867_v24, %v1867_v24 }
 0x23e   : > { %v1882_v28 = vpack.c.bf16 %v1875_v26, %v1875_v26  ;;  %v1876_v29 = vcombine.high %v1874_v27, %v1874_v27  ;;  %v1883_v31 = vpack.c.bf16 %v1874_v27, %v1874_v27 }
 0x240   : > { %2173 = vmatprep.mubr.bf16.mxu0 %v1882_v28  ;;  %v1884_v30 = vpack.c.bf16 %v1876_v29, %v1876_v29 }
 0x241   : > { %2174 = vmatmul.mubr.bf16.vlgmr.msra.gmra.mrb[4].mxu0 %v1881_v16 }
 0x242   : > { %2213 = vmatprep.mubr.bf16.mxu1 %v1884_v30 }
 0x243   : > { %2214 = vmatmul.mubr.bf16.vlgmr.msra.gmra.mrb[4].mxu1 %v1883_v31 }
 0x314   : > { %v2639_v32 = vpop.f32.mrb[4].mxu0 }
 0x315   : > { %v2640_v33 = vpop.f32.mrb[5].mxu0 }
 0x316   : > { %v2641_v34 = vadd.f32 %v2640_v33, %v2639_v32  ;;  %v2642_v19 = vpop.f32.mrb[6].mxu0  ;;  %v2661_v35 = vpop.f32.mrb[4].mxu1 }
 0x317   : > { %v2643_v36 = vpop.f32.mrb[7].mxu0  ;;  %v2662_v18 = vpop.f32.mrb[5].mxu1 }
 0x318   : > { %v2663_v37 = vadd.f32 %v2662_v18, %v2661_v35  ;;  %v2664_v38 = vpop.f32.mrb[6].mxu1 }
 0x319   : > { %v2665_v39 = vpop.f32.mrb[7].mxu1 }
 0x31a   : > { %v2216_v40 = vadd.f32 %v2663_v37, %v2641_v34 }
 0x31c   : > { %2221 = vst [vmem:[%s328_s7] sm:$0x3] %v2216_v40 }
 0x31d   : > { %3227 = shalt.err (!%p3224_p3)
}
 0x31e   : > { %s3228_s26 = scalar_lea.hbm %s3837_s21, 32  ;;  %s3232_s25 = scalar_lea.hbm %s3890_s4, 64 }
 0x31f   : > { %p3229_p6 = scmp.ne.s32.totalorder %s3837_s21, %s3228_s26  ;;  %p3233_p8 = scmp.lt.u32.totalorder %s3837_s21, %s3890_s4 }
 0x320   : > { %p3234_p12 = scmp.lt.u32.totalorder %s3232_s25, %s3228_s26  ;;  %p3236_p1 = scmp.lt.u32.totalorder %s3228_s26, %s3837_s21 }
 0x321   : > { %p3230_p2 = pnand %p3229_p6, %p3924_p4 }
 0x322   : > { %p3235_p7 = por %p3234_p12, %p3233_p8 }
 0x323   : > { %p3231_p10 = pneg %p3230_p2 }
 0x324   : > { %p3237_p13 = por %p3236_p1, %p3235_p7 }
 0x326   : > { %p3238_p11 = pnand %p3237_p13, %p3231_p10 }
 0x328   : > { %3241 = shalt.err (!%p3238_p11)
}
 0x329   : > { %2695 = dma.vmem_to_hbm [thread:$0]  (%p3924_p4), %s3839_s13, 32, %s3837_s21, %s2223_s27  }
 0x32a PF: > { %s2248_s28 = sand.u32 1, %s3284_s15   ;;  %p3925_p0 = scmp.ne.s32.totalorder %s3913_s8, 0 }
 0x32b   : > { %p3926_p5 = scmp.ge.s32.totalorder %s3304_s20, 2  ;;  %s2249_s12 = scalar_lea.sflag [#allocation5], %s2248_s28 }
 0x32d   : > { %p2712_p9 = pnand %p3926_p5, %p3925_p0 }
 0x32f   : > { %3279 = dma.done.wait (!%p2712_p9), %s2249_s12, 32  }
 0x330   : > { %3281 = vsyncadd (!%p2712_p9), %s2249_s12, 4294967264  ;;  %s24_s20 = sadd.s32 1, %s3304_s20   ;;  %s3927_s30 = sld [smem:[#allocation16_spill]] }
 0x331   : > { %p21_p3 = scmp.ge.s32.totalorder %s24_s20, 4   ;;  %s3928_s17 = sld [smem:[#allocation18_spill]] }
 0x332   : > { %s3929_s5 = sld [smem:[#allocation17_spill]]  ;;  %s3930_s15 = smov %s3288_s16 }
 0x333   : > { %s3932_s18 = smov %s3300_s19  ;;  %23 = sbr.rel (!%p21_p3) target bundleno = 11 (0xb), region = 119 }
 0x336   : > { %s3931_s16 = smov %s3927_s30 }
 0x338   : > { %s3933_s19 = smov %s3929_s5 }
 0x33a   :  { %2254 = vsyncpa [#allocation4], 1 }
 0x33b   :  { %2256 = vsyncpa [#allocation4 + $0x1], 1 }
 0x33c   :  { %2257 = vsyncpa [#allocation7], 1 }
 0x33d   :  { %2259 = vsyncpa [#allocation7 + $0x1], 1 }
 0x33e   :  { %2260 = vsyncpa [#allocation10], 1 }
 0x33f   :  { %2262 = vsyncpa [#allocation10 + $0x1], 1 }
 0x340   :  { %2263 = vsyncpa [#allocation5], 1 }
 0x341   :  { %2265 = vsyncpa [#allocation5 + $0x1], 1 }

</bundles_post_ra>
